<compile_context>
chip_gen: v6e
topology: v6e:2x2x1
jax: 0.10.0
libtpu: 0.0.40
codegen_flags: <defaults>
</compile_context>

<pallas_src>
import functools

import jax
import jax.numpy as jnp
import numpy as np
from jax import lax
from jax.experimental import pallas as pl
from jax.experimental.pallas import tpu as pltpu


def _sab_kernel(x_ref, w_ref, o_ref, *, H, W):
    # x_ref: (1, C, H*W) VMEM  -- one batch image, channels on sublanes, pixels on lanes
    # w_ref: (2, 25)     SMEM  -- conv weights: w_ref[0]=taps on max map, w_ref[1]=mean map
    # o_ref: (1, C, H*W) VMEM
    P = H * W
    # Zero-extension width: must cover every tap offset dh*W+dw (|off| <= 2W+2).
    # Round up to a multiple of 128 so concat boundaries stay lane-tile aligned.
    PADF = ((2 * W + 2 + 127) // 128) * 128

    xb = x_ref[0]                                        # (C, P), lane-dense, input dtype
    xf = xb.astype(jnp.float32)                          # no-op for f32 inputs

    # --- ChannelPool: max & mean over channels (single cross-sublane reduce each)
    mx = jnp.max(xf, axis=0, keepdims=True)              # (1, P)
    mn = jnp.mean(xf, axis=0, keepdims=True)             # (1, P)

    # Zero-extend along the flattened pixel axis so every shifted tap read is
    # in bounds; vertical (row) over-runs automatically read zeros.
    zpad = jnp.zeros((1, PADF), jnp.float32)
    ext_mx = jnp.concatenate([zpad, mx, zpad], axis=1)   # (1, P + 2*PADF)
    ext_mn = jnp.concatenate([zpad, mn, zpad], axis=1)   # (1, P + 2*PADF)

    # --- 5x5 conv (2 -> 1 channel, pad=2, no bias) in flattened pixel coords --
    col = lax.broadcasted_iota(jnp.int32, (1, P), 1) % W
    acc = jnp.zeros((1, P), jnp.float32)
    for kw in range(5):                                  # group taps by dw: one column mask each
        dw = kw - 2
        part = jnp.zeros((1, P), jnp.float32)
        for kh in range(5):
            dh = kh - 2
            k = kh * 5 + kw
            start = PADF + dh * W + dw                   # static lane offset
            part = part + (w_ref[0, k] * ext_mx[:, start:start + P]
                           + w_ref[1, k] * ext_mn[:, start:start + P])
        # Zero pixels whose shifted column wrapped into a neighbouring row.
        if dw < 0:
            part = jnp.where(col >= -dw, part, 0.0)
        elif dw > 0:
            part = jnp.where(col < W - dw, part, 0.0)
        acc = acc + part

    # --- ReLU -> sigmoid -> scale the input (exp on the EUP, VPU for the rest)
    r = jnp.maximum(acc, 0.0)                            # Basic's ReLU
    scale = 1.0 / (1.0 + jnp.exp(-r))                    # sigmoid, exact
    o_ref[0] = (xf * scale).astype(o_ref.dtype)          # dense (C, P) unmasked store


def sab_forward(x_nchw, conv_weight):
    """x_nchw: (N, C, H, W); conv_weight: (1, 2, 5, 5) (PyTorch OIHW, bias=False)."""
    N, C, H, W = x_nchw.shape
    P = H * W

    x3 = x_nchw.reshape(N, C, P)                         # contiguous -> free reshape
    w2 = conv_weight.reshape(2, 25).astype(jnp.float32)  # [in_channel, kh*5+kw]

    kernel = functools.partial(_sab_kernel, H=H, W=W)

    out3 = pl.pallas_call(
        kernel,
        out_shape=jax.ShapeDtypeStruct((N, C, P), x_nchw.dtype),
        grid_spec=pltpu.PrefetchScalarGridSpec(
            num_scalar_prefetch=0,
            grid=(N,),
            in_specs=[
                pl.BlockSpec((1, C, P), lambda n: (n, 0, 0)),
                pl.BlockSpec(memory_space=pltpu.MemorySpace.SMEM),
            ],
            out_specs=pl.BlockSpec((1, C, P), lambda n: (n, 0, 0)),
        ),
        compiler_params=pltpu.CompilerParams(
            dimension_semantics=("parallel",)),
    )(x3, w2)

    return out3.reshape(N, C, H, W)


def _reference(x, weight):
    """Pure-JAX reference matching the PyTorch SAB forward."""
    mx = jnp.max(x, axis=1, keepdims=True)
    mn = jnp.mean(x, axis=1, keepdims=True)
    comp = jnp.concatenate([mx, mn], axis=1)             # (N, 2, H, W)
    conv = lax.conv_general_dilated(
        comp, weight, window_strides=(1, 1), padding=((2, 2), (2, 2)),
        dimension_numbers=("NCHW", "OIHW", "NCHW"))
    scale = jax.nn.sigmoid(jnp.maximum(conv, 0.0))       # Basic's ReLU then sigmoid
    return x * scale


if __name__ == "__main__":
    N, C, H, W = 2, 64, 16, 16

    key = jax.random.PRNGKey(0)
    kx, kw = jax.random.split(key)
    x = jax.random.normal(kx, (N, C, H, W), jnp.float32)
    fan_in = 2 * 5 * 5
    weight = jax.random.normal(kw, (1, 2, 5, 5), jnp.float32) / np.sqrt(fan_in)

    out = jax.block_until_ready(sab_forward(x, weight))
    ref = jax.block_until_ready(_reference(x, weight))

    assert out.shape == (N, C, H, W)
    np.testing.assert_allclose(np.asarray(out), np.asarray(ref),
                               rtol=1e-3, atol=1e-3)
    print("KERNEL_OK")
</pallas_src>

<mosaic_0001>
module attributes {stable_mosaic.version = 11 : i64} {
  func.func @_sab_kernel(%arg0: i32, %arg1: memref<1x64x256xf32, #tpu.memory_space<vmem>>, %arg2: memref<2x25xf32, #tpu.memory_space<smem>>, %arg3: memref<1x64x256xf32, #tpu.memory_space<vmem>>) attributes {dimension_semantics = [#tpu.dimension_semantics<parallel>], iteration_bounds = array<i64: 2>, scalar_prefetch = 0 : i64, scratch_operands = 0 : i64, tpu.core_type = #tpu.core_type<tc>, window_params = [{transform_indices = @transform_0, window_bounds = array<i64: 1, 64, 256>}, {transform_indices = @transform_1, window_bounds = array<i64: 2, 25>}, {transform_indices = @transform_2, window_bounds = array<i64: 1, 64, 256>}]} {
    %c0 = arith.constant 0 : index
    %c0_0 = arith.constant 0 : index
    %c0_1 = arith.constant 0 : index
    %0 = vector.load %arg1[%c0, %c0_0, %c0_1] : memref<1x64x256xf32, #tpu.memory_space<vmem>>, vector<1x64x256xf32>
    %1 = vector.shape_cast %0 : vector<1x64x256xf32> to vector<64x256xf32>
    %cst = arith.constant dense<0xFF800000> : vector<256xf32>
    %2 = vector.multi_reduction <maximumf>, %1, %cst [0] : vector<64x256xf32> to vector<256xf32>
    %3 = vector.shape_cast %2 : vector<256xf32> to vector<1x256xf32>
    %cst_2 = arith.constant dense<0.000000e+00> : vector<256xf32>
    %4 = vector.multi_reduction <add>, %1, %cst_2 [0] : vector<64x256xf32> to vector<256xf32>
    %5 = vector.shape_cast %4 : vector<256xf32> to vector<1x256xf32>
    %cst_3 = arith.constant 6.400000e+01 : f32
    %6 = vector.broadcast %cst_3 : f32 to vector<1x256xf32>
    %7 = arith.divf %5, %6 : vector<1x256xf32>
    %cst_4 = arith.constant 0.000000e+00 : f32
    %8 = vector.broadcast %cst_4 : f32 to vector<1x128xf32>
    %9 = tpu.concatenate %8, %3, %8 in 1 : vector<1x128xf32>, vector<1x256xf32>, vector<1x128xf32> -> vector<1x512xf32>
    %10 = tpu.concatenate %8, %7, %8 in 1 : vector<1x128xf32>, vector<1x256xf32>, vector<1x128xf32> -> vector<1x512xf32>
    %11 = tpu.iota {dimensions = array<i32: 1>} : vector<1x256xi32>
    %c16_i32 = arith.constant 16 : i32
    %c0_i32 = arith.constant 0 : i32
    %12 = arith.cmpi eq, %c16_i32, %c0_i32 : i32
    %c1_i32 = arith.constant 1 : i32
    %13 = arith.select %12, %c1_i32, %c16_i32 : i32
    %14 = vector.broadcast %13 : i32 to vector<1x256xi32>
    %15 = arith.remsi %11, %14 : vector<1x256xi32>
    %c0_i32_5 = arith.constant 0 : i32
    %16 = vector.broadcast %c0_i32_5 : i32 to vector<1x256xi32>
    %17 = arith.cmpi ne, %15, %16 : vector<1x256xi32>
    %c0_i32_6 = arith.constant 0 : i32
    %18 = vector.broadcast %c0_i32_6 : i32 to vector<1x256xi32>
    %19 = arith.cmpi slt, %15, %18 : vector<1x256xi32>
    %c0_i32_7 = arith.constant 0 : i32
    %20 = arith.cmpi slt, %13, %c0_i32_7 : i32
    %21 = vector.broadcast %20 : i1 to vector<1x256xi1>
    %22 = vector.broadcast %21 : vector<1x256xi1> to vector<1x256xi1>
    %23 = arith.xori %19, %22 : vector<1x256xi1>
    %24 = arith.andi %23, %17 : vector<1x256xi1>
    %25 = vector.broadcast %13 : i32 to vector<1x256xi32>
    %26 = arith.addi %15, %25 : vector<1x256xi32>
    %27 = arith.select %24, %26, %15 : vector<1x256xi1>, vector<1x256xi32>
    %cst_8 = arith.constant 0.000000e+00 : f32
    %28 = vector.broadcast %cst_8 : f32 to vector<1x256xf32>
    %cst_9 = arith.constant 0.000000e+00 : f32
    %29 = vector.broadcast %cst_9 : f32 to vector<1x256xf32>
    %c0_10 = arith.constant 0 : index
    %c0_11 = arith.constant 0 : index
    %30 = memref.load %arg2[%c0_10, %c0_11] : memref<2x25xf32, #tpu.memory_space<smem>>
    %31 = vector.extract_strided_slice %9 {offsets = [0, 94], sizes = [1, 256], strides = [1, 1]} : vector<1x512xf32> to vector<1x256xf32>
    %32 = vector.broadcast %30 : f32 to vector<1x256xf32>
    %33 = arith.mulf %32, %31 : vector<1x256xf32>
    %c1 = arith.constant 1 : index
    %c0_12 = arith.constant 0 : index
    %34 = memref.load %arg2[%c1, %c0_12] : memref<2x25xf32, #tpu.memory_space<smem>>
    %35 = vector.extract_strided_slice %10 {offsets = [0, 94], sizes = [1, 256], strides = [1, 1]} : vector<1x512xf32> to vector<1x256xf32>
    %36 = vector.broadcast %34 : f32 to vector<1x256xf32>
    %37 = arith.mulf %36, %35 : vector<1x256xf32>
    %38 = arith.addf %33, %37 : vector<1x256xf32>
    %39 = arith.addf %29, %38 : vector<1x256xf32>
    %c0_13 = arith.constant 0 : index
    %c5 = arith.constant 5 : index
    %40 = memref.load %arg2[%c0_13, %c5] : memref<2x25xf32, #tpu.memory_space<smem>>
    %41 = vector.extract_strided_slice %9 {offsets = [0, 110], sizes = [1, 256], strides = [1, 1]} : vector<1x512xf32> to vector<1x256xf32>
    %42 = vector.broadcast %40 : f32 to vector<1x256xf32>
    %43 = arith.mulf %42, %41 : vector<1x256xf32>
    %c1_14 = arith.constant 1 : index
    %c5_15 = arith.constant 5 : index
    %44 = memref.load %arg2[%c1_14, %c5_15] : memref<2x25xf32, #tpu.memory_space<smem>>
    %45 = vector.extract_strided_slice %10 {offsets = [0, 110], sizes = [1, 256], strides = [1, 1]} : vector<1x512xf32> to vector<1x256xf32>
    %46 = vector.broadcast %44 : f32 to vector<1x256xf32>
    %47 = arith.mulf %46, %45 : vector<1x256xf32>
    %48 = arith.addf %43, %47 : vector<1x256xf32>
    %49 = arith.addf %39, %48 : vector<1x256xf32>
    %c0_16 = arith.constant 0 : index
    %c10 = arith.constant 10 : index
    %50 = memref.load %arg2[%c0_16, %c10] : memref<2x25xf32, #tpu.memory_space<smem>>
    %51 = vector.extract_strided_slice %9 {offsets = [0, 126], sizes = [1, 256], strides = [1, 1]} : vector<1x512xf32> to vector<1x256xf32>
    %52 = vector.broadcast %50 : f32 to vector<1x256xf32>
    %53 = arith.mulf %52, %51 : vector<1x256xf32>
    %c1_17 = arith.constant 1 : index
    %c10_18 = arith.constant 10 : index
    %54 = memref.load %arg2[%c1_17, %c10_18] : memref<2x25xf32, #tpu.memory_space<smem>>
    %55 = vector.extract_strided_slice %10 {offsets = [0, 126], sizes = [1, 256], strides = [1, 1]} : vector<1x512xf32> to vector<1x256xf32>
    %56 = vector.broadcast %54 : f32 to vector<1x256xf32>
    %57 = arith.mulf %56, %55 : vector<1x256xf32>
    %58 = arith.addf %53, %57 : vector<1x256xf32>
    %59 = arith.addf %49, %58 : vector<1x256xf32>
    %c0_19 = arith.constant 0 : index
    %c15 = arith.constant 15 : index
    %60 = memref.load %arg2[%c0_19, %c15] : memref<2x25xf32, #tpu.memory_space<smem>>
    %61 = vector.extract_strided_slice %9 {offsets = [0, 142], sizes = [1, 256], strides = [1, 1]} : vector<1x512xf32> to vector<1x256xf32>
    %62 = vector.broadcast %60 : f32 to vector<1x256xf32>
    %63 = arith.mulf %62, %61 : vector<1x256xf32>
    %c1_20 = arith.constant 1 : index
    %c15_21 = arith.constant 15 : index
    %64 = memref.load %arg2[%c1_20, %c15_21] : memref<2x25xf32, #tpu.memory_space<smem>>
    %65 = vector.extract_strided_slice %10 {offsets = [0, 142], sizes = [1, 256], strides = [1, 1]} : vector<1x512xf32> to vector<1x256xf32>
    %66 = vector.broadcast %64 : f32 to vector<1x256xf32>
    %67 = arith.mulf %66, %65 : vector<1x256xf32>
    %68 = arith.addf %63, %67 : vector<1x256xf32>
    %69 = arith.addf %59, %68 : vector<1x256xf32>
    %c0_22 = arith.constant 0 : index
    %c20 = arith.constant 20 : index
    %70 = memref.load %arg2[%c0_22, %c20] : memref<2x25xf32, #tpu.memory_space<smem>>
    %71 = vector.extract_strided_slice %9 {offsets = [0, 158], sizes = [1, 256], strides = [1, 1]} : vector<1x512xf32> to vector<1x256xf32>
    %72 = vector.broadcast %70 : f32 to vector<1x256xf32>
    %73 = arith.mulf %72, %71 : vector<1x256xf32>
    %c1_23 = arith.constant 1 : index
    %c20_24 = arith.constant 20 : index
    %74 = memref.load %arg2[%c1_23, %c20_24] : memref<2x25xf32, #tpu.memory_space<smem>>
    %75 = vector.extract_strided_slice %10 {offsets = [0, 158], sizes = [1, 256], strides = [1, 1]} : vector<1x512xf32> to vector<1x256xf32>
    %76 = vector.broadcast %74 : f32 to vector<1x256xf32>
    %77 = arith.mulf %76, %75 : vector<1x256xf32>
    %78 = arith.addf %73, %77 : vector<1x256xf32>
    %79 = arith.addf %69, %78 : vector<1x256xf32>
    %c2_i32 = arith.constant 2 : i32
    %80 = vector.broadcast %c2_i32 : i32 to vector<1x256xi32>
    %81 = arith.cmpi sge, %27, %80 : vector<1x256xi32>
    %cst_25 = arith.constant 0.000000e+00 : f32
    %82 = vector.broadcast %cst_25 : f32 to vector<1x256xf32>
    %83 = arith.select %81, %79, %82 : vector<1x256xi1>, vector<1x256xf32>
    %84 = arith.addf %28, %83 : vector<1x256xf32>
    %cst_26 = arith.constant 0.000000e+00 : f32
    %85 = vector.broadcast %cst_26 : f32 to vector<1x256xf32>
    %c0_27 = arith.constant 0 : index
    %c1_28 = arith.constant 1 : index
    %86 = memref.load %arg2[%c0_27, %c1_28] : memref<2x25xf32, #tpu.memory_space<smem>>
    %87 = vector.extract_strided_slice %9 {offsets = [0, 95], sizes = [1, 256], strides = [1, 1]} : vector<1x512xf32> to vector<1x256xf32>
    %88 = vector.broadcast %86 : f32 to vector<1x256xf32>
    %89 = arith.mulf %88, %87 : vector<1x256xf32>
    %c1_29 = arith.constant 1 : index
    %c1_30 = arith.constant 1 : index
    %90 = memref.load %arg2[%c1_29, %c1_30] : memref<2x25xf32, #tpu.memory_space<smem>>
    %91 = vector.extract_strided_slice %10 {offsets = [0, 95], sizes = [1, 256], strides = [1, 1]} : vector<1x512xf32> to vector<1x256xf32>
    %92 = vector.broadcast %90 : f32 to vector<1x256xf32>
    %93 = arith.mulf %92, %91 : vector<1x256xf32>
    %94 = arith.addf %89, %93 : vector<1x256xf32>
    %95 = arith.addf %85, %94 : vector<1x256xf32>
    %c0_31 = arith.constant 0 : index
    %c6 = arith.constant 6 : index
    %96 = memref.load %arg2[%c0_31, %c6] : memref<2x25xf32, #tpu.memory_space<smem>>
    %97 = vector.extract_strided_slice %9 {offsets = [0, 111], sizes = [1, 256], strides = [1, 1]} : vector<1x512xf32> to vector<1x256xf32>
    %98 = vector.broadcast %96 : f32 to vector<1x256xf32>
    %99 = arith.mulf %98, %97 : vector<1x256xf32>
    %c1_32 = arith.constant 1 : index
    %c6_33 = arith.constant 6 : index
    %100 = memref.load %arg2[%c1_32, %c6_33] : memref<2x25xf32, #tpu.memory_space<smem>>
    %101 = vector.extract_strided_slice %10 {offsets = [0, 111], sizes = [1, 256], strides = [1, 1]} : vector<1x512xf32> to vector<1x256xf32>
    %102 = vector.broadcast %100 : f32 to vector<1x256xf32>
    %103 = arith.mulf %102, %101 : vector<1x256xf32>
    %104 = arith.addf %99, %103 : vector<1x256xf32>
    %105 = arith.addf %95, %104 : vector<1x256xf32>
    %c0_34 = arith.constant 0 : index
    %c11 = arith.constant 11 : index
    %106 = memref.load %arg2[%c0_34, %c11] : memref<2x25xf32, #tpu.memory_space<smem>>
    %107 = vector.extract_strided_slice %9 {offsets = [0, 127], sizes = [1, 256], strides = [1, 1]} : vector<1x512xf32> to vector<1x256xf32>
    %108 = vector.broadcast %106 : f32 to vector<1x256xf32>
    %109 = arith.mulf %108, %107 : vector<1x256xf32>
    %c1_35 = arith.constant 1 : index
    %c11_36 = arith.constant 11 : index
    %110 = memref.load %arg2[%c1_35, %c11_36] : memref<2x25xf32, #tpu.memory_space<smem>>
    %111 = vector.extract_strided_slice %10 {offsets = [0, 127], sizes = [1, 256], strides = [1, 1]} : vector<1x512xf32> to vector<1x256xf32>
    %112 = vector.broadcast %110 : f32 to vector<1x256xf32>
    %113 = arith.mulf %112, %111 : vector<1x256xf32>
    %114 = arith.addf %109, %113 : vector<1x256xf32>
    %115 = arith.addf %105, %114 : vector<1x256xf32>
    %c0_37 = arith.constant 0 : index
    %c16 = arith.constant 16 : index
    %116 = memref.load %arg2[%c0_37, %c16] : memref<2x25xf32, #tpu.memory_space<smem>>
    %117 = vector.extract_strided_slice %9 {offsets = [0, 143], sizes = [1, 256], strides = [1, 1]} : vector<1x512xf32> to vector<1x256xf32>
    %118 = vector.broadcast %116 : f32 to vector<1x256xf32>
    %119 = arith.mulf %118, %117 : vector<1x256xf32>
    %c1_38 = arith.constant 1 : index
    %c16_39 = arith.constant 16 : index
    %120 = memref.load %arg2[%c1_38, %c16_39] : memref<2x25xf32, #tpu.memory_space<smem>>
    %121 = vector.extract_strided_slice %10 {offsets = [0, 143], sizes = [1, 256], strides = [1, 1]} : vector<1x512xf32> to vector<1x256xf32>
    %122 = vector.broadcast %120 : f32 to vector<1x256xf32>
    %123 = arith.mulf %122, %121 : vector<1x256xf32>
    %124 = arith.addf %119, %123 : vector<1x256xf32>
    %125 = arith.addf %115, %124 : vector<1x256xf32>
    %c0_40 = arith.constant 0 : index
    %c21 = arith.constant 21 : index
    %126 = memref.load %arg2[%c0_40, %c21] : memref<2x25xf32, #tpu.memory_space<smem>>
    %127 = vector.extract_strided_slice %9 {offsets = [0, 159], sizes = [1, 256], strides = [1, 1]} : vector<1x512xf32> to vector<1x256xf32>
    %128 = vector.broadcast %126 : f32 to vector<1x256xf32>
    %129 = arith.mulf %128, %127 : vector<1x256xf32>
    %c1_41 = arith.constant 1 : index
    %c21_42 = arith.constant 21 : index
    %130 = memref.load %arg2[%c1_41, %c21_42] : memref<2x25xf32, #tpu.memory_space<smem>>
    %131 = vector.extract_strided_slice %10 {offsets = [0, 159], sizes = [1, 256], strides = [1, 1]} : vector<1x512xf32> to vector<1x256xf32>
    %132 = vector.broadcast %130 : f32 to vector<1x256xf32>
    %133 = arith.mulf %132, %131 : vector<1x256xf32>
    %134 = arith.addf %129, %133 : vector<1x256xf32>
    %135 = arith.addf %125, %134 : vector<1x256xf32>
    %c1_i32_43 = arith.constant 1 : i32
    %136 = vector.broadcast %c1_i32_43 : i32 to vector<1x256xi32>
    %137 = arith.cmpi sge, %27, %136 : vector<1x256xi32>
    %cst_44 = arith.constant 0.000000e+00 : f32
    %138 = vector.broadcast %cst_44 : f32 to vector<1x256xf32>
    %139 = arith.select %137, %135, %138 : vector<1x256xi1>, vector<1x256xf32>
    %140 = arith.addf %84, %139 : vector<1x256xf32>
    %cst_45 = arith.constant 0.000000e+00 : f32
    %141 = vector.broadcast %cst_45 : f32 to vector<1x256xf32>
    %c0_46 = arith.constant 0 : index
    %c2 = arith.constant 2 : index
    %142 = memref.load %arg2[%c0_46, %c2] : memref<2x25xf32, #tpu.memory_space<smem>>
    %143 = vector.extract_strided_slice %9 {offsets = [0, 96], sizes = [1, 256], strides = [1, 1]} : vector<1x512xf32> to vector<1x256xf32>
    %144 = vector.broadcast %142 : f32 to vector<1x256xf32>
    %145 = arith.mulf %144, %143 : vector<1x256xf32>
    %c1_47 = arith.constant 1 : index
    %c2_48 = arith.constant 2 : index
    %146 = memref.load %arg2[%c1_47, %c2_48] : memref<2x25xf32, #tpu.memory_space<smem>>
    %147 = vector.extract_strided_slice %10 {offsets = [0, 96], sizes = [1, 256], strides = [1, 1]} : vector<1x512xf32> to vector<1x256xf32>
    %148 = vector.broadcast %146 : f32 to vector<1x256xf32>
    %149 = arith.mulf %148, %147 : vector<1x256xf32>
    %150 = arith.addf %145, %149 : vector<1x256xf32>
    %151 = arith.addf %141, %150 : vector<1x256xf32>
    %c0_49 = arith.constant 0 : index
    %c7 = arith.constant 7 : index
    %152 = memref.load %arg2[%c0_49, %c7] : memref<2x25xf32, #tpu.memory_space<smem>>
    %153 = vector.extract_strided_slice %9 {offsets = [0, 112], sizes = [1, 256], strides = [1, 1]} : vector<1x512xf32> to vector<1x256xf32>
    %154 = vector.broadcast %152 : f32 to vector<1x256xf32>
    %155 = arith.mulf %154, %153 : vector<1x256xf32>
    %c1_50 = arith.constant 1 : index
    %c7_51 = arith.constant 7 : index
    %156 = memref.load %arg2[%c1_50, %c7_51] : memref<2x25xf32, #tpu.memory_space<smem>>
    %157 = vector.extract_strided_slice %10 {offsets = [0, 112], sizes = [1, 256], strides = [1, 1]} : vector<1x512xf32> to vector<1x256xf32>
    %158 = vector.broadcast %156 : f32 to vector<1x256xf32>
    %159 = arith.mulf %158, %157 : vector<1x256xf32>
    %160 = arith.addf %155, %159 : vector<1x256xf32>
    %161 = arith.addf %151, %160 : vector<1x256xf32>
    %c0_52 = arith.constant 0 : index
    %c12 = arith.constant 12 : index
    %162 = memref.load %arg2[%c0_52, %c12] : memref<2x25xf32, #tpu.memory_space<smem>>
    %163 = vector.extract_strided_slice %9 {offsets = [0, 128], sizes = [1, 256], strides = [1, 1]} : vector<1x512xf32> to vector<1x256xf32>
    %164 = vector.broadcast %162 : f32 to vector<1x256xf32>
    %165 = arith.mulf %164, %163 : vector<1x256xf32>
    %c1_53 = arith.constant 1 : index
    %c12_54 = arith.constant 12 : index
    %166 = memref.load %arg2[%c1_53, %c12_54] : memref<2x25xf32, #tpu.memory_space<smem>>
    %167 = vector.extract_strided_slice %10 {offsets = [0, 128], sizes = [1, 256], strides = [1, 1]} : vector<1x512xf32> to vector<1x256xf32>
    %168 = vector.broadcast %166 : f32 to vector<1x256xf32>
    %169 = arith.mulf %168, %167 : vector<1x256xf32>
    %170 = arith.addf %165, %169 : vector<1x256xf32>
    %171 = arith.addf %161, %170 : vector<1x256xf32>
    %c0_55 = arith.constant 0 : index
    %c17 = arith.constant 17 : index
    %172 = memref.load %arg2[%c0_55, %c17] : memref<2x25xf32, #tpu.memory_space<smem>>
    %173 = vector.extract_strided_slice %9 {offsets = [0, 144], sizes = [1, 256], strides = [1, 1]} : vector<1x512xf32> to vector<1x256xf32>
    %174 = vector.broadcast %172 : f32 to vector<1x256xf32>
    %175 = arith.mulf %174, %173 : vector<1x256xf32>
    %c1_56 = arith.constant 1 : index
    %c17_57 = arith.constant 17 : index
    %176 = memref.load %arg2[%c1_56, %c17_57] : memref<2x25xf32, #tpu.memory_space<smem>>
    %177 = vector.extract_strided_slice %10 {offsets = [0, 144], sizes = [1, 256], strides = [1, 1]} : vector<1x512xf32> to vector<1x256xf32>
    %178 = vector.broadcast %176 : f32 to vector<1x256xf32>
    %179 = arith.mulf %178, %177 : vector<1x256xf32>
    %180 = arith.addf %175, %179 : vector<1x256xf32>
    %181 = arith.addf %171, %180 : vector<1x256xf32>
    %c0_58 = arith.constant 0 : index
    %c22 = arith.constant 22 : index
    %182 = memref.load %arg2[%c0_58, %c22] : memref<2x25xf32, #tpu.memory_space<smem>>
    %183 = vector.extract_strided_slice %9 {offsets = [0, 160], sizes = [1, 256], strides = [1, 1]} : vector<1x512xf32> to vector<1x256xf32>
    %184 = vector.broadcast %182 : f32 to vector<1x256xf32>
    %185 = arith.mulf %184, %183 : vector<1x256xf32>
    %c1_59 = arith.constant 1 : index
    %c22_60 = arith.constant 22 : index
    %186 = memref.load %arg2[%c1_59, %c22_60] : memref<2x25xf32, #tpu.memory_space<smem>>
    %187 = vector.extract_strided_slice %10 {offsets = [0, 160], sizes = [1, 256], strides = [1, 1]} : vector<1x512xf32> to vector<1x256xf32>
    %188 = vector.broadcast %186 : f32 to vector<1x256xf32>
    %189 = arith.mulf %188, %187 : vector<1x256xf32>
    %190 = arith.addf %185, %189 : vector<1x256xf32>
    %191 = arith.addf %181, %190 : vector<1x256xf32>
    %192 = arith.addf %140, %191 : vector<1x256xf32>
    %cst_61 = arith.constant 0.000000e+00 : f32
    %193 = vector.broadcast %cst_61 : f32 to vector<1x256xf32>
    %c0_62 = arith.constant 0 : index
    %c3 = arith.constant 3 : index
    %194 = memref.load %arg2[%c0_62, %c3] : memref<2x25xf32, #tpu.memory_space<smem>>
    %195 = vector.extract_strided_slice %9 {offsets = [0, 97], sizes = [1, 256], strides = [1, 1]} : vector<1x512xf32> to vector<1x256xf32>
    %196 = vector.broadcast %194 : f32 to vector<1x256xf32>
    %197 = arith.mulf %196, %195 : vector<1x256xf32>
    %c1_63 = arith.constant 1 : index
    %c3_64 = arith.constant 3 : index
    %198 = memref.load %arg2[%c1_63, %c3_64] : memref<2x25xf32, #tpu.memory_space<smem>>
    %199 = vector.extract_strided_slice %10 {offsets = [0, 97], sizes = [1, 256], strides = [1, 1]} : vector<1x512xf32> to vector<1x256xf32>
    %200 = vector.broadcast %198 : f32 to vector<1x256xf32>
    %201 = arith.mulf %200, %199 : vector<1x256xf32>
    %202 = arith.addf %197, %201 : vector<1x256xf32>
    %203 = arith.addf %193, %202 : vector<1x256xf32>
    %c0_65 = arith.constant 0 : index
    %c8 = arith.constant 8 : index
    %204 = memref.load %arg2[%c0_65, %c8] : memref<2x25xf32, #tpu.memory_space<smem>>
    %205 = vector.extract_strided_slice %9 {offsets = [0, 113], sizes = [1, 256], strides = [1, 1]} : vector<1x512xf32> to vector<1x256xf32>
    %206 = vector.broadcast %204 : f32 to vector<1x256xf32>
    %207 = arith.mulf %206, %205 : vector<1x256xf32>
    %c1_66 = arith.constant 1 : index
    %c8_67 = arith.constant 8 : index
    %208 = memref.load %arg2[%c1_66, %c8_67] : memref<2x25xf32, #tpu.memory_space<smem>>
    %209 = vector.extract_strided_slice %10 {offsets = [0, 113], sizes = [1, 256], strides = [1, 1]} : vector<1x512xf32> to vector<1x256xf32>
    %210 = vector.broadcast %208 : f32 to vector<1x256xf32>
    %211 = arith.mulf %210, %209 : vector<1x256xf32>
    %212 = arith.addf %207, %211 : vector<1x256xf32>
    %213 = arith.addf %203, %212 : vector<1x256xf32>
    %c0_68 = arith.constant 0 : index
    %c13 = arith.constant 13 : index
    %214 = memref.load %arg2[%c0_68, %c13] : memref<2x25xf32, #tpu.memory_space<smem>>
    %215 = vector.extract_strided_slice %9 {offsets = [0, 129], sizes = [1, 256], strides = [1, 1]} : vector<1x512xf32> to vector<1x256xf32>
    %216 = vector.broadcast %214 : f32 to vector<1x256xf32>
    %217 = arith.mulf %216, %215 : vector<1x256xf32>
    %c1_69 = arith.constant 1 : index
    %c13_70 = arith.constant 13 : index
    %218 = memref.load %arg2[%c1_69, %c13_70] : memref<2x25xf32, #tpu.memory_space<smem>>
    %219 = vector.extract_strided_slice %10 {offsets = [0, 129], sizes = [1, 256], strides = [1, 1]} : vector<1x512xf32> to vector<1x256xf32>
    %220 = vector.broadcast %218 : f32 to vector<1x256xf32>
    %221 = arith.mulf %220, %219 : vector<1x256xf32>
    %222 = arith.addf %217, %221 : vector<1x256xf32>
    %223 = arith.addf %213, %222 : vector<1x256xf32>
    %c0_71 = arith.constant 0 : index
    %c18 = arith.constant 18 : index
    %224 = memref.load %arg2[%c0_71, %c18] : memref<2x25xf32, #tpu.memory_space<smem>>
    %225 = vector.extract_strided_slice %9 {offsets = [0, 145], sizes = [1, 256], strides = [1, 1]} : vector<1x512xf32> to vector<1x256xf32>
    %226 = vector.broadcast %224 : f32 to vector<1x256xf32>
    %227 = arith.mulf %226, %225 : vector<1x256xf32>
    %c1_72 = arith.constant 1 : index
    %c18_73 = arith.constant 18 : index
    %228 = memref.load %arg2[%c1_72, %c18_73] : memref<2x25xf32, #tpu.memory_space<smem>>
    %229 = vector.extract_strided_slice %10 {offsets = [0, 145], sizes = [1, 256], strides = [1, 1]} : vector<1x512xf32> to vector<1x256xf32>
    %230 = vector.broadcast %228 : f32 to vector<1x256xf32>
    %231 = arith.mulf %230, %229 : vector<1x256xf32>
    %232 = arith.addf %227, %231 : vector<1x256xf32>
    %233 = arith.addf %223, %232 : vector<1x256xf32>
    %c0_74 = arith.constant 0 : index
    %c23 = arith.constant 23 : index
    %234 = memref.load %arg2[%c0_74, %c23] : memref<2x25xf32, #tpu.memory_space<smem>>
    %235 = vector.extract_strided_slice %9 {offsets = [0, 161], sizes = [1, 256], strides = [1, 1]} : vector<1x512xf32> to vector<1x256xf32>
    %236 = vector.broadcast %234 : f32 to vector<1x256xf32>
    %237 = arith.mulf %236, %235 : vector<1x256xf32>
    %c1_75 = arith.constant 1 : index
    %c23_76 = arith.constant 23 : index
    %238 = memref.load %arg2[%c1_75, %c23_76] : memref<2x25xf32, #tpu.memory_space<smem>>
    %239 = vector.extract_strided_slice %10 {offsets = [0, 161], sizes = [1, 256], strides = [1, 1]} : vector<1x512xf32> to vector<1x256xf32>
    %240 = vector.broadcast %238 : f32 to vector<1x256xf32>
    %241 = arith.mulf %240, %239 : vector<1x256xf32>
    %242 = arith.addf %237, %241 : vector<1x256xf32>
    %243 = arith.addf %233, %242 : vector<1x256xf32>
    %c15_i32 = arith.constant 15 : i32
    %244 = vector.broadcast %c15_i32 : i32 to vector<1x256xi32>
    %245 = arith.cmpi slt, %27, %244 : vector<1x256xi32>
    %cst_77 = arith.constant 0.000000e+00 : f32
    %246 = vector.broadcast %cst_77 : f32 to vector<1x256xf32>
    %247 = arith.select %245, %243, %246 : vector<1x256xi1>, vector<1x256xf32>
    %248 = arith.addf %192, %247 : vector<1x256xf32>
    %cst_78 = arith.constant 0.000000e+00 : f32
    %249 = vector.broadcast %cst_78 : f32 to vector<1x256xf32>
    %c0_79 = arith.constant 0 : index
    %c4 = arith.constant 4 : index
    %250 = memref.load %arg2[%c0_79, %c4] : memref<2x25xf32, #tpu.memory_space<smem>>
    %251 = vector.extract_strided_slice %9 {offsets = [0, 98], sizes = [1, 256], strides = [1, 1]} : vector<1x512xf32> to vector<1x256xf32>
    %252 = vector.broadcast %250 : f32 to vector<1x256xf32>
    %253 = arith.mulf %252, %251 : vector<1x256xf32>
    %c1_80 = arith.constant 1 : index
    %c4_81 = arith.constant 4 : index
    %254 = memref.load %arg2[%c1_80, %c4_81] : memref<2x25xf32, #tpu.memory_space<smem>>
    %255 = vector.extract_strided_slice %10 {offsets = [0, 98], sizes = [1, 256], strides = [1, 1]} : vector<1x512xf32> to vector<1x256xf32>
    %256 = vector.broadcast %254 : f32 to vector<1x256xf32>
    %257 = arith.mulf %256, %255 : vector<1x256xf32>
    %258 = arith.addf %253, %257 : vector<1x256xf32>
    %259 = arith.addf %249, %258 : vector<1x256xf32>
    %c0_82 = arith.constant 0 : index
    %c9 = arith.constant 9 : index
    %260 = memref.load %arg2[%c0_82, %c9] : memref<2x25xf32, #tpu.memory_space<smem>>
    %261 = vector.extract_strided_slice %9 {offsets = [0, 114], sizes = [1, 256], strides = [1, 1]} : vector<1x512xf32> to vector<1x256xf32>
    %262 = vector.broadcast %260 : f32 to vector<1x256xf32>
    %263 = arith.mulf %262, %261 : vector<1x256xf32>
    %c1_83 = arith.constant 1 : index
    %c9_84 = arith.constant 9 : index
    %264 = memref.load %arg2[%c1_83, %c9_84] : memref<2x25xf32, #tpu.memory_space<smem>>
    %265 = vector.extract_strided_slice %10 {offsets = [0, 114], sizes = [1, 256], strides = [1, 1]} : vector<1x512xf32> to vector<1x256xf32>
    %266 = vector.broadcast %264 : f32 to vector<1x256xf32>
    %267 = arith.mulf %266, %265 : vector<1x256xf32>
    %268 = arith.addf %263, %267 : vector<1x256xf32>
    %269 = arith.addf %259, %268 : vector<1x256xf32>
    %c0_85 = arith.constant 0 : index
    %c14 = arith.constant 14 : index
    %270 = memref.load %arg2[%c0_85, %c14] : memref<2x25xf32, #tpu.memory_space<smem>>
    %271 = vector.extract_strided_slice %9 {offsets = [0, 130], sizes = [1, 256], strides = [1, 1]} : vector<1x512xf32> to vector<1x256xf32>
    %272 = vector.broadcast %270 : f32 to vector<1x256xf32>
    %273 = arith.mulf %272, %271 : vector<1x256xf32>
    %c1_86 = arith.constant 1 : index
    %c14_87 = arith.constant 14 : index
    %274 = memref.load %arg2[%c1_86, %c14_87] : memref<2x25xf32, #tpu.memory_space<smem>>
    %275 = vector.extract_strided_slice %10 {offsets = [0, 130], sizes = [1, 256], strides = [1, 1]} : vector<1x512xf32> to vector<1x256xf32>
    %276 = vector.broadcast %274 : f32 to vector<1x256xf32>
    %277 = arith.mulf %276, %275 : vector<1x256xf32>
    %278 = arith.addf %273, %277 : vector<1x256xf32>
    %279 = arith.addf %269, %278 : vector<1x256xf32>
    %c0_88 = arith.constant 0 : index
    %c19 = arith.constant 19 : index
    %280 = memref.load %arg2[%c0_88, %c19] : memref<2x25xf32, #tpu.memory_space<smem>>
    %281 = vector.extract_strided_slice %9 {offsets = [0, 146], sizes = [1, 256], strides = [1, 1]} : vector<1x512xf32> to vector<1x256xf32>
    %282 = vector.broadcast %280 : f32 to vector<1x256xf32>
    %283 = arith.mulf %282, %281 : vector<1x256xf32>
    %c1_89 = arith.constant 1 : index
    %c19_90 = arith.constant 19 : index
    %284 = memref.load %arg2[%c1_89, %c19_90] : memref<2x25xf32, #tpu.memory_space<smem>>
    %285 = vector.extract_strided_slice %10 {offsets = [0, 146], sizes = [1, 256], strides = [1, 1]} : vector<1x512xf32> to vector<1x256xf32>
    %286 = vector.broadcast %284 : f32 to vector<1x256xf32>
    %287 = arith.mulf %286, %285 : vector<1x256xf32>
    %288 = arith.addf %283, %287 : vector<1x256xf32>
    %289 = arith.addf %279, %288 : vector<1x256xf32>
    %c0_91 = arith.constant 0 : index
    %c24 = arith.constant 24 : index
    %290 = memref.load %arg2[%c0_91, %c24] : memref<2x25xf32, #tpu.memory_space<smem>>
    %291 = vector.extract_strided_slice %9 {offsets = [0, 162], sizes = [1, 256], strides = [1, 1]} : vector<1x512xf32> to vector<1x256xf32>
    %292 = vector.broadcast %290 : f32 to vector<1x256xf32>
    %293 = arith.mulf %292, %291 : vector<1x256xf32>
    %c1_92 = arith.constant 1 : index
    %c24_93 = arith.constant 24 : index
    %294 = memref.load %arg2[%c1_92, %c24_93] : memref<2x25xf32, #tpu.memory_space<smem>>
    %295 = vector.extract_strided_slice %10 {offsets = [0, 162], sizes = [1, 256], strides = [1, 1]} : vector<1x512xf32> to vector<1x256xf32>
    %296 = vector.broadcast %294 : f32 to vector<1x256xf32>
    %297 = arith.mulf %296, %295 : vector<1x256xf32>
    %298 = arith.addf %293, %297 : vector<1x256xf32>
    %299 = arith.addf %289, %298 : vector<1x256xf32>
    %c14_i32 = arith.constant 14 : i32
    %300 = vector.broadcast %c14_i32 : i32 to vector<1x256xi32>
    %301 = arith.cmpi slt, %27, %300 : vector<1x256xi32>
    %cst_94 = arith.constant 0.000000e+00 : f32
    %302 = vector.broadcast %cst_94 : f32 to vector<1x256xf32>
    %303 = arith.select %301, %299, %302 : vector<1x256xi1>, vector<1x256xf32>
    %304 = arith.addf %248, %303 : vector<1x256xf32>
    %cst_95 = arith.constant 0.000000e+00 : f32
    %305 = vector.broadcast %cst_95 : f32 to vector<1x256xf32>
    %306 = arith.maximumf %304, %305 : vector<1x256xf32>
    %cst_96 = arith.constant 0.000000e+00 : f32
    %307 = vector.broadcast %cst_96 : f32 to vector<1x256xf32>
    %308 = arith.subf %307, %306 : vector<1x256xf32>
    %309 = math.exp %308 : vector<1x256xf32>
    %cst_97 = arith.constant 1.000000e+00 : f32
    %310 = vector.broadcast %cst_97 : f32 to vector<1x256xf32>
    %311 = arith.addf %310, %309 : vector<1x256xf32>
    %cst_98 = arith.constant 1.000000e+00 : f32
    %312 = vector.broadcast %cst_98 : f32 to vector<1x256xf32>
    %313 = arith.divf %312, %311 : vector<1x256xf32>
    %314 = vector.broadcast %313 : vector<1x256xf32> to vector<64x256xf32>
    %315 = arith.mulf %1, %314 : vector<64x256xf32>
    %c0_99 = arith.constant 0 : index
    %c0_100 = arith.constant 0 : index
    %c0_101 = arith.constant 0 : index
    %316 = vector.load %arg3[%c0_99, %c0_100, %c0_101] : memref<1x64x256xf32, #tpu.memory_space<vmem>>, vector<1x64x256xf32>
    %317 = vector.shape_cast %316 : vector<1x64x256xf32> to vector<64x256xf32>
    %318 = vector.shape_cast %315 : vector<64x256xf32> to vector<1x64x256xf32>
    tpu.vector_store %arg3[%c0_99, %c0_100, %c0_101], %318 {strides = array<i32>} : memref<1x64x256xf32, #tpu.memory_space<vmem>>, vector<1x64x256xf32>,
    return
  }
  func.func @transform_0(%arg0: i32) -> (i32, i32, i32) {
    %c0_i32 = arith.constant 0 : i32
    %c0_i32_0 = arith.constant 0 : i32
    %c0_i32_1 = arith.constant 0 : i32
    return %arg0, %c0_i32, %c0_i32_0 : i32, i32, i32
  }
  func.func @transform_1(%arg0: i32) -> (i32, i32) {
    %c0_i32 = arith.constant 0 : i32
    %c0_i32_0 = arith.constant 0 : i32
    %c0_i32_1 = arith.constant 0 : i32
    return %c0_i32, %c0_i32_0 : i32, i32
  }
  func.func @transform_2(%arg0: i32) -> (i32, i32, i32) {
    %c0_i32 = arith.constant 0 : i32
    %c0_i32_0 = arith.constant 0 : i32
    %c0_i32_1 = arith.constant 0 : i32
    return %arg0, %c0_i32, %c0_i32_0 : i32, i32, i32
  }
}

</mosaic_0001>

<bundles_post_ra>
// kernel: tpu_custom_call.1
= control target key start
LH: loop header
LB: loop body
LE: loop exit
PB: predicated region body
PF: predicated region fallthrough
CT: control target
= control target key end

     0   :  { %7 = vsyncpa [#allocation3], 0  ;;  %s2237_s0 = inlined_call_operand.hbm [shape: f32[2,64,256], index: 0, kind: input, shape index: {}]   ;;  %s2238_s1 = inlined_call_operand.hbm [shape: f32[2,25], index: 1, kind: input, shape index: {}]   ;;  %s2239_s2 = inlined_call_operand.hbm [shape: f32[2,64,256], index: 2, kind: output, shape index: {}]  }
   0x1   :  { %9 = vsyncpa [#allocation3 + $0x1], 0 }
   0x2   :  { %10 = vsyncpa [#allocation5], 0 }
   0x3   :  { %11 = vsyncpa [#allocation4], 0 }
   0x4   :  { %13 = vsyncpa [#allocation4 + $0x1], 0  ;;  %s1499_s9 = smov 0   ;;  %s1501_s10 = smov 0  }
   0x5   :  { %s1503_s11 = smov 0   ;;  %s1505_s12 = smov 0  }
   0x6 LB: > { %s1520_s13 = sadd.s32 4294967295, %s1466_s12   ;;  %s1198_s14 = sadd.s32 4294967294, %s1466_s12   ;;  %s1466_s12 = sphi %s1505_s12, %s2261_s12   ;;  %s1462_s11 = sphi %s1503_s11, %s2260_s11   ;;  %s1458_s10 = sphi %s1501_s10, %s2259_s10   ;;  %s1454_s9 = sphi %s1499_s9, %s2258_s9  }
   0x7   : > { %s1524_s15 = sadd.s32 1, %s1466_s12   ;;  %s26_s16 = sadd.s32 1, %s1462_s11 }
   0x8   : > { %s23_s17 = ssub.s32 %s1466_s12, %s1524_s15  ;;  %p33_p0 = scmp.ne.s32.totalorder %s1462_s11, %s1458_s10 }
   0x9   : > { %p24_p1 = scmp.eq.s32.totalorder %s23_s17, 0  ;;  %p34_p2 = scmp.eq.s32.totalorder %s1466_s12, 0 }
   0xa   : > { %p39_p3 = scmp.ne.s32.totalorder %s1458_s10, %s1454_s9  ;;  %p2240_p4 = scmp.eq.s32.totalorder %s1520_s13, 0 }
   0xb   : > { %s1536_s18 = scalar_select %p24_p1, %s1462_s11, %s26_s16  }
   0xc   : > { %p1538_p5 = por %p34_p2, %p33_p0  ;;  %p1544_p6 = por %p2240_p4, %p39_p3 }
   0xd   : > { %p84_p7 = scmp.eq.s32.totalorder %s1520_s13, 1  ;;  %p90_p8 = scmp.eq.s32.totalorder %s1198_s14, 1 }
   0xe   : > { %s2245_s20 = scalar_select %p1544_p6, 1, 0 }
   0xf   : > { %p1199_p9 = scmp.ge.s32.totalorder %s1466_s12, 1  ;;  %p97_p10 = scmp.lt.s32.totalorder %s1466_s12, 3 }
  0x10   : > { %p1551_p11 = por %p84_p7, %p33_p0  ;;  %p1555_p12 = por %p90_p8, %p39_p3 }
  0x11   : > { %p1559_p13 = pnand %p1199_p9, %p97_p10  ;;  %p1286_p4 = scmp.lt.s32.totalorder %s1466_s12, 2 }
  0x12   : > { %s2246_s21 = scalar_select %p1551_p11, 1, 0 }
  0x13   : > { %s2247_s22 = scalar_select %p1555_p12, 1, 0 }
  0x14   : > { %s2248_s23 = scalar_select %p1559_p13, 1, 0 }
  0x15   : > { %p1273_p2 = pneg %p1559_p13  ;;  %s119_s24 = sand.u32 1, %s1462_s11  }
  0x16   : > { %s1263_s25 = sshll.u32 %s1466_s12, 11  ;;  %p2249_p6 = scmp.eq.s32.totalorder %s1520_s13, 0 }
  0x17   : > { %p1573_p7 = pnand %p1286_p4, %p1538_p5  ;;  %s1202_s27 = sshll.u32 %s119_s24, 7 }
  0x18   : > { %p1274_p0 = pnand %p1273_p2, %p2249_p6  ;;  %s1468_s28 = smov [#allocation6]  }
  0x19   : > { %s1583_s5 = scalar_lea.hbm %s2237_s0, %s1263_s25  ;;  %s123_s6 = scalar_lea.vmem [#allocation2], %s1202_s27 }
  0x1a   : > { %1276 = dma.hbm_to_smem (!%p1274_p0), %s2238_s1, 32, %s1468_s28, [#allocation5]  }
  0x1b   : > { %s130_s7 = sshll.u32 %s123_s6, 4  ;;  %s1587_s8 = scalar_lea.sflag [#allocation3], %s119_s24  ;;  %s1585_s7 = int_to_ptr.vmem [resolvable:$true] %s130_s7 }
  0x1c   : > { %s1370_s14 = scalar_lea.hbm %s1583_s5, 2048  ;;  %p1372_p4 = pneg %p1573_p7 }
  0x1d   : > { %p1371_p3 = scmp.ne.s32.totalorder %s1583_s5, %s1370_s14  ;;  %s1375_s19 = scalar_lea.hbm %s2237_s0, 4096 }
  0x1e   : > { %p1376_p8 = scmp.lt.s32.totalorder %s1583_s5, %s2237_s0  ;;  %p1377_p9 = scmp.lt.s32.totalorder %s1375_s19, %s1370_s14 }
  0x1f   : > { %p1373_p5 = pnand %p1372_p4, %p1371_p3 }
  0x20   : > { %p1378_p10 = por %p1377_p9, %p1376_p8 }
  0x21   : > { %p1374_p6 = pneg %p1373_p5 }
  0x23   : > { %p1379_p2 = pnand %p1378_p10, %p1374_p6 }
  0x25   : > { %1382 = shalt.err (!%p1379_p2)
}
  0x26   : > { %s1383_s24 = scalar_lea.vmem %s1585_s7, 2048  ;;  %s1469_s27 = smov [#allocation2]  }
  0x27   : > { %p1384_p0 = scmp.ne.s32.totalorder %s1585_s7, %s1383_s24  ;;  %s1388_s29 = sshll.u32 %s1469_s27, 4  ;;  %s1389_s29 = int_to_ptr.vmem [resolvable:$false] %s1388_s29 }
  0x28   : > { %s1390_s30 = scalar_lea.vmem %s1389_s29, 4096  ;;  %p1391_p5 = scmp.lt.s32.totalorder %s1585_s7, %s1389_s29 }
  0x29   : > { %p1386_p1 = pnand %p1384_p0, %p1372_p4  ;;  %p1392_p12 = scmp.lt.s32.totalorder %s1390_s30, %s1383_s24 }
  0x2b   : > { %p1387_p3 = pneg %p1386_p1  ;;  %p1393_p11 = por %p1392_p12, %p1391_p5 }
  0x2d   : > { %p1394_p13 = pnand %p1393_p11, %p1387_p3 }
  0x2f   : > { %1397 = shalt.err (!%p1394_p13)
}
  0x30   : > { %s1470_s3 = smov 256   ;;  %s1471_s4 = smov 16  }
  0x31   : > { %1280 = dma.hbm_to_vmem [thread:$0]  (!%p1573_p7), %s1583_s5, 2048, %s1585_s7, %s1587_s8, %s1470_s3, %s1470_s3, %s1471_s4  }
  0x32   : > { %p2251_p4 = scmp.ne.s32.totalorder %s2248_s23, 0 }
  0x33   : > { %s1611_s6 = sand.u32 (!%p2251_p4), 1, %s1458_s10   ;;  %p2252_p11 = scmp.ne.s32.totalorder (!%p2251_p4), %s2245_s20, 0 }
  0x34   : > { %142 = sbr.rel (%p2251_p4) target bundleno = 518 (0x206), region = 28  ;;  %s1206_s14 = sshll.u32 (!%p2251_p4), %s1611_s6, 7 }
  0x35   : > { %s145_s16 = scalar_lea.sflag (!%p2251_p4), [#allocation3], %s1611_s6  ;;  %s1617_s17 = scalar_lea.vmem (!%p2251_p4), [#allocation2], %s1206_s14 }
  0x39   : > { %1441 = dma.done.wait (%p2252_p11), %s145_s16, 2048  }
  0x3a   : > { %1443 = vsyncadd (%p2252_p11), %s145_s16, 4294965248  ;;  %p2253_p12 = scmp.eq.s32.totalorder %s1520_s13, 0 }
  0x3c   : > { %1445 = dma.done.wait (%p2253_p12), [#allocation5], 32   ;;  %p2254_p13 = pmov %p2253_p12 }
  0x3e   : > { %1447 = vsyncadd (%p2254_p13), [#allocation5], 4294967264 }
  0x3f   : > { %157 = sfence }
  0x40   : > { %s1627_s23 = sld [smem:[#allocation6 + $0x6]]  ;;  %v175_v0 = vld [vmem:[%s1617_s17 + $0x8] sm:$0xff]  ;;  %v177_v1 = vld [vmem:[%s1617_s17 + $0x18] sm:$0xff]  ;;  %v174_v10 = vld [vmem:[%s1617_s17] sm:$0xff]  ;;  %s1472_s30 = smov 112   ;;  %vm310_vm0 = vcmask 916480  }
  0x41   : > { %v179_v2 = vld [vmem:[%s1617_s17 + $0x28] sm:$0xff]  ;;  %s1632_s20 = sld [smem:[#allocation6 + $0x86]]  ;;  %v181_v3 = vld [vmem:[%s1617_s17 + $0x38] sm:$0xff]  ;;  %v229_v6 = vadd.f32 %v177_v1, %v175_v0  ;;  %v176_v13 = vld [vmem:[%s1617_s17 + $0x10] sm:$0xff]  ;;  %s1473_s3 = smov 96   ;;  %vm341_vm1 = vcmask 785408  }
  0x42   : > { %v183_v4 = vld [vmem:[%s1617_s17 + $0x48] sm:$0xff]  ;;  %v203_v5 = vmax.f32 %v175_v0, %v179_v2  ;;  %s1636_s26 = sld [smem:[#allocation6 + $0x5]]  ;;  %v185_v7 = vld [vmem:[%s1617_s17 + $0x58] sm:$0xff]  ;;  %v204_v9 = vmax.f32 %v177_v1, %v181_v3  ;;  %v178_v14 = vld [vmem:[%s1617_s17 + $0x20] sm:$0xff]  ;;  %v216_v33 = vadd.f32 %v176_v13, %v174_v10  ;;  %s1474_s4 = smov 80   ;;  %vm372_vm2 = vcmask 654336  }
  0x43   : > { %v189_v8 = vld [vmem:[%s1617_s17 + $0x78] sm:$0xff]  ;;  %s1641_s5 = sld [smem:[#allocation6 + $0x85]]  ;;  %v230_v12 = vadd.f32 %v229_v6, %v179_v2  ;;  %v1646_v15 = vld [vmem:[%s1617_s17 + $0x30] sm:$0xff]  ;;  %v187_v16 = vld [vmem:[%s1617_s17 + $0x68] sm:$0xff]  ;;  %v190_v18 = vmax.f32 %v174_v10, %v178_v14  ;;  %vm403_vm3 = vcmask 523264   ;;  %vm423_vm4 = vcmask 277504  }
  0x44   : > { %v205_v11 = vmax.f32 %v203_v5, %v183_v4  ;;  %s1648_s7 = sld [smem:[#allocation6 + $0xb]]  ;;  %v206_v17 = vmax.f32 %v204_v9, %v185_v7  ;;  %v191_v19 = vmax.f32 %v176_v13, %v1646_v15  ;;  %v1655_v22 = vld [vmem:[%s1617_s17 + $0x40] sm:$0xff]  ;;  %v1658_v23 = vld [vmem:[%s1617_s17 + $0x50] sm:$0xff]  ;;  %v217_v57 = vadd.f32 %v216_v33, %v178_v14  ;;  %p2255_p7 = scmp.ne.s32.totalorder %s2246_s21, 0 }
  0x45   : > { %s1652_s8 = sld [smem:[#allocation6 + $0x8b]]  ;;  %v231_v21 = vadd.f32 %v230_v12, %v181_v3  ;;  %v1666_v26 = vld [vmem:[%s1617_s17 + $0x70] sm:$0xff]  ;;  %v192_v27 = vmax.f32 %v190_v18, %v1655_v22  ;;  %v1677_v32 = vld [vmem:[%s1617_s17 + $0x60] sm:$0xff]  ;;  %vm579_vm5 = vcmask 269312   ;;  %vm726_vm10 = vcmask 261120  }
  0x46   : > { %v207_v20 = vmax.f32 %v205_v11, %v187_v16  ;;  %v1661_v24 = vstv %s1627_s23  ;;  %s1663_s19 = sld [smem:[#allocation6 + $0xa]]  ;;  %v208_v25 = vmax.f32 %v206_v17, %v189_v8  ;;  %v193_v28 = vmax.f32 %v191_v19, %v1658_v23 }
  0x47   : > { %v450_v29 = vmul.f32 0.0, %v1661_v24  ;;  %v1672_v30 = vstv %s1632_s20  ;;  %s1674_s25 = sld [smem:[#allocation6 + $0x8a]]  ;;  %v232_v31 = vadd.f32 %v231_v21, %v183_v4  ;;  %v194_v37 = vmax.f32 %v192_v27, %v1677_v32 }
  0x48   : > { %v455_v34 = vmul.f32 0.0, %v1672_v30  ;;  %v1681_v35 = vstv %s1636_s26  ;;  %s1683_s28 = sld [smem:[#allocation6 + $0xf]]  ;;  %v209_v36 = vmax.f32 %v207_v20, %v208_v25  ;;  %v195_v41 = vmax.f32 %v193_v28, %v1666_v26 }
  0x49   : > { %v290_v38 = vmul.f32 0.0, %v1681_v35  ;;  %v1688_v39 = vstv %s1641_s5  ;;  %s1215_s24 = sld [smem:[#allocation6 + $0x8f]]  ;;  %v233_v40 = vadd.f32 %v232_v31, %v185_v7  ;;  %v218_v11 = vadd.f32 %v217_v57, %v1646_v15 }
  0x4a   : > { %v458_v42 = vadd.f32 %v455_v34, %v450_v29  ;;  %v295_v43 = vmul.f32 0.0, %v1688_v39  ;;  %v1693_v44 = vstv %s1648_s7  ;;  %s1230_s27 = sld [smem:[#allocation6 + $0x7]]  ;;  %v210_v45 = vrot.slane %v209_v36, 4 }
  0x4b   : > { %v480_v46 = vmul.f32 0.0, %v1693_v44  ;;  %v1697_v47 = vstv %s1652_s8  ;;  %s1231_s29 = sld [smem:[#allocation6 + $0x87]]  ;;  %v234_v48 = vadd.f32 %v233_v40, %v187_v16  ;;  %v196_v49 = vmax.f32 %v194_v37, %v195_v41 }
  0x4c   : > { %464 = vrot.lane.b32.xlu1 %v458_v42, %s1472_s30  ;;  %v298_v50 = vadd.f32 %v295_v43, %v290_v38  ;;  %v485_v51 = vmul.f32 0.0, %v1697_v47  ;;  %v1702_v52 = vstv %s1663_s19  ;;  %v211_v53 = vmax.f32 %v209_v36, %v210_v45  ;;  %s1224_s16 = sld [smem:[#allocation6 + $0x10]] }
  0x4d   : > { %v321_v54 = vmul.f32 0.0, %v1702_v52  ;;  %v1706_v55 = vstv %s1674_s25  ;;  %v235_v56 = vadd.f32 %v234_v48, %v189_v8  ;;  %v197_v1 = vrot.slane %v196_v49, 4  ;;  %s1225_s23 = sld [smem:[#allocation6 + $0x90]] }
  0x4e   : > { %304 = vrot.lane.b32.xlu0 %v298_v50, %s1472_s30  ;;  %v488_v58 = vadd.f32 %v485_v51, %v480_v46  ;;  %v326_v59 = vmul.f32 0.0, %v1706_v55  ;;  %v1711_v60 = vstv %s1683_s28  ;;  %v212_v61 = vrot.slane %v211_v53, 2  ;;  %s1240_s20 = sld [smem:[#allocation6 + $0x8]] }
  0x4f   : > { %v354_v62 = vmul.f32 0.0, %v1711_v60  ;;  %v1714_v63 = vstv %s1215_s24  ;;  %v236_v0 = vrot.slane %v235_v56, 4  ;;  %v198_v16 = vmax.f32 %v196_v49, %v197_v1  ;;  %s1241_s26 = sld [smem:[#allocation6 + $0x88]] }
  0x50   : > { %494 = vrot.lane.b32.xlu1 %v488_v58, %s1473_s3  ;;  %v329_v2 = vadd.f32 %v326_v59, %v321_v54  ;;  %v359_v3 = vmul.f32 0.0, %v1714_v63  ;;  %v1718_v4 = vstv %s1230_s27  ;;  %v213_v5 = vmax.f32 %v211_v53, %v212_v61  ;;  %s1791_s5 = sld [smem:[#allocation6 + $0xc]] }
  0x51   : > { %v606_v6 = vmul.f32 0.0, %v1718_v4  ;;  %v1721_v7 = vstv %s1231_s29  ;;  %v237_v8 = vadd.f32 %v236_v0, %v235_v56  ;;  %v219_v17 = vadd.f32 %v218_v11, %v1655_v22  ;;  %s1796_s7 = sld [smem:[#allocation6 + $0x8c]] }
  0x52   : > { %335 = vrot.lane.b32.xlu0 %v329_v2, %s1473_s3  ;;  %v362_v9 = vadd.f32 %v359_v3, %v354_v62  ;;  %v611_v10 = vmul.f32 0.0, %v1721_v7  ;;  %v214_v12 = vrot.slane %v213_v5, 1  ;;  %v199_v25 = vrot.slane %v198_v16, 2  ;;  %s1216_s8 = sld [smem:[#allocation6 + $0x14]] }
  0x53   : > { %v238_v13 = vrot.slane %v237_v8, 2  ;;  %v220_v19 = vadd.f32 %v219_v17, %v1658_v23  ;;  %s1217_s19 = sld [smem:[#allocation6 + $0x94]]  ;;  %vm880_vm11 = vcmask 252928   ;;  %vm1036_vm14 = vcmask 244736  }
  0x54   : > { %370 = vrot.lane.b32.xlu1 %v362_v9, %s1474_s4  ;;  %v614_v14 = vadd.f32 %v611_v10, %v606_v6  ;;  %v1730_v20 = vmax.f32 %v213_v5, %v214_v12  ;;  %v200_v22 = vmax.f32 %v198_v16, %v199_v25  ;;  %v509_v5 = vstv %s1224_s16  ;;  %s1226_s25 = sld [smem:[#allocation6 + $0x15]] }
  0x55   : > { %v239_v18 = vadd.f32 %v238_v13, %v237_v8  ;;  %v221_v15 = vadd.f32 %v220_v19, %v1677_v32  ;;  %v514_v6 = vstv %s1225_s23  ;;  %v750_v10 = vstv %s1240_s20  ;;  %s1227_s28 = sld [smem:[#allocation6 + $0x95]]  ;;  %s1475_s23 = smov 64  }
  0x56   : > { %620 = vrot.lane.b32.xlu0 %v614_v14, %s1472_s30  ;;  %v292_v31 = vmul.f32 %v1681_v35, %v1730_v20  ;;  %v452_v23 = vmul.f32 %v1661_v24, %v1730_v20  ;;  %v201_v38 = vrot.slane %v200_v22, 1  ;;  %v482_v51 = vmul.f32 %v1693_v44, %v1730_v20  ;;  %s1242_s24 = sld [smem:[#allocation6 + $0xd]] }
  0x57   : > { %v240_v21 = vrot.slane %v239_v18, 1  ;;  %v222_v28 = vadd.f32 %v221_v15, %v1666_v26  ;;  %v608_v8 = vmul.f32 %v1718_v4, %v1730_v20  ;;  %v511_v9 = vmul.f32 %v509_v5, %v1730_v20  ;;  %s1243_s27 = sld [smem:[#allocation6 + $0x8d]] }
  0x58   : > { %v1745_v42 = vmax.f32 %v200_v22, %v201_v38  ;;  %v755_v13 = vstv %s1241_s26  ;;  %v751_v14 = vmul.f32 0.0, %v750_v10  ;;  %v517_v22 = vmul.f32 0.0, %v514_v6  ;;  %s1250_s29 = sld [smem:[#allocation6 + $0x9]] }
  0x59   : > { %v241_v27 = vadd.f32 %v240_v21, %v239_v18  ;;  %v223_v33 = vrot.slane %v222_v28, 4  ;;  %v756_v16 = vmul.f32 0.0, %v755_v13  ;;  %s1251_s16 = sld [smem:[#allocation6 + $0x89]] }
  0x5a   : > { %v291_v48 = vmul.f32 %v1681_v35, %v1745_v42  ;;  %v322_v49 = vmul.f32 %v1702_v52, %v1745_v42  ;;  %v451_v50 = vmul.f32 %v1661_v24, %v1745_v42  ;;  %v323_v24 = vmul.f32 %v1702_v52, %v1730_v20  ;;  %s1234_s20 = sld [smem:[#allocation6 + $0x11]] }
  0x5b   : > { %v1734_v29 = vmul.f32 0.015625, %v241_v27  ;;  %v224_v32 = vadd.f32 %v223_v33, %v222_v28  ;;  %v481_v52 = vmul.f32 %v1693_v44, %v1745_v42  ;;  %v510_v21 = vmul.f32 %v509_v5, %v1745_v42  ;;  %s1235_s26 = sld [smem:[#allocation6 + $0x91]] }
  0x5c   : > { %v759_v25 = vadd.f32 %v756_v16, %v751_v14  ;;  %v635_v27 = vstv %s1791_s5  ;;  %v639_v28 = vstv %s1796_s7  ;;  %v752_v38 = vmul.f32 %v750_v10, %v1745_v42  ;;  %s1244_s5 = sld [smem:[#allocation6 + $0x12]] }
  0x5d   : > { %v297_v34 = vmul.f32 %v1688_v39, %v1734_v29  ;;  %v457_v36 = vmul.f32 %v1672_v30, %v1734_v29  ;;  %v225_v26 = vrot.slane %v224_v32, 2  ;;  %v487_v35 = vmul.f32 %v1697_v47, %v1734_v29  ;;  %s1245_s7 = sld [smem:[#allocation6 + $0x92]] }
  0x5e   : > { %v328_v59 = vmul.f32 %v1706_v55, %v1734_v29  ;;  %v613_v44 = vmul.f32 %v1721_v7, %v1734_v29  ;;  %v516_v12 = vmul.f32 %v514_v6, %v1734_v29  ;;  %v758_v15 = vmul.f32 %v755_v13, %v1734_v29 }
  0x5f   : > { %v300_v37 = vadd.f32 %v297_v34, %v292_v31  ;;  %v460_v40 = vadd.f32 %v457_v36, %v452_v23  ;;  %v226_v41 = vadd.f32 %v225_v26, %v224_v32  ;;  %v490_v61 = vadd.f32 %v487_v35, %v482_v51 }
  0x60   : > { %v331_v0 = vadd.f32 %v328_v59, %v323_v24  ;;  %v616_v17 = vadd.f32 %v613_v44, %v608_v8  ;;  %v519_v18 = vadd.f32 %v516_v12, %v511_v9  ;;  %v512_v31 = vmul.f32 0.0, %v509_v5 }
  0x61   : > { %308 = vrot.lane.b32.xlu1 %v300_v37, %s1472_s30  ;;  %v227_v43 = vrot.slane %v226_v41, 1  ;;  %v637_v33 = vmul.f32 %v635_v27, %v1730_v20  ;;  %v641_v34 = vmul.f32 %v639_v28, %v1734_v29  ;;  %v382_v32 = vstv %s1216_s8  ;;  %s1252_s8 = sld [smem:[#allocation6 + $0xe]] }
  0x62   : > { %v387_v37 = vstv %s1217_s19  ;;  %v384_v26 = vmul.f32 %v382_v32, %v1730_v20  ;;  %v906_v5 = vstv %s1250_s29  ;;  %s1253_s19 = sld [smem:[#allocation6 + $0x8e]] }
  0x63   : > { %v228_v45 = vadd.f32 %v227_v43, %v226_v41  ;;  %v520_v41 = vadd.f32 %v517_v22, %v512_v31  ;;  %v909_v14 = vmul.f32 %v906_v5, %v1730_v20  ;;  %v908_v22 = vmul.f32 %v906_v5, %v1745_v42  ;;  %s1255_s29 = sld [smem:[#allocation6 + $0x93]] }
  0x65   : > { %468 = vrot.lane.b32.xlu1 %v460_v40, %s1472_s30  ;;  %v1748_v46 = vmul.f32 0.015625, %v228_v45  ;;  %v389_v40 = vmul.f32 %v387_v37, %v1734_v29  ;;  %v643_v45 = vadd.f32 %v641_v34, %v637_v33 }
  0x67   : > { %v296_v53 = vmul.f32 %v1688_v39, %v1748_v46  ;;  %v456_v54 = vmul.f32 %v1672_v30, %v1748_v46  ;;  %v327_v56 = vmul.f32 %v1706_v55, %v1748_v46  ;;  %v607_v39 = vmul.f32 %v1718_v4, %v1745_v42 }
  0x68   : > { %v612_v62 = vmul.f32 %v1721_v7, %v1748_v46  ;;  %v352_v55 = vmul.f32 %v1711_v60, %v1745_v42  ;;  %v486_v1 = vmul.f32 %v1697_v47, %v1748_v46  ;;  %v357_v3 = vmul.f32 %v1714_v63, %v1748_v46 }
  0x69   : > { %v299_v57 = vadd.f32 %v296_v53, %v291_v48  ;;  %v330_v58 = vadd.f32 %v327_v56, %v322_v49  ;;  %v459_v30 = vadd.f32 %v456_v54, %v451_v50  ;;  %v353_v4 = vmul.f32 %v1711_v60, %v1730_v20 }
  0x6a   : > { %v615_v2 = vadd.f32 %v612_v62, %v607_v39  ;;  %v489_v47 = vadd.f32 %v486_v1, %v481_v52  ;;  %v360_v11 = vadd.f32 %v357_v3, %v352_v55  ;;  %v358_v7 = vmul.f32 %v1714_v63, %v1734_v29 }
  0x6b   : > { %306 = vrot.lane.b32.xlu0 %v299_v57, %s1472_s30  ;;  %337 = vrot.lane.b32.xlu1 %v330_v58, %s1473_s3  ;;  %v753_v60 = vmul.f32 %v750_v10, %v1730_v20  ;;  %v515_v63 = vmul.f32 %v514_v6, %v1748_v46  ;;  %v757_v43 = vmul.f32 %v755_v13, %v1748_v46  ;;  %v539_v48 = vstv %s1226_s25  ;;  %s1236_s25 = sld [smem:[#allocation6 + $0x16]] }
  0x6c   : > { %v361_v19 = vadd.f32 %v358_v7, %v353_v4  ;;  %v544_v49 = vstv %s1227_s28  ;;  %v636_v50 = vmul.f32 %v635_v27, %v1745_v42  ;;  %v392_v51 = vadd.f32 %v389_v40, %v384_v26  ;;  %s1237_s28 = sld [smem:[#allocation6 + $0x96]] }
  0x6d   : > { %v518_v23 = vadd.f32 %v515_v63, %v510_v21  ;;  %v761_v36 = vadd.f32 %v758_v15, %v753_v60  ;;  %v540_v53 = vmul.f32 %v539_v48, %v1745_v42  ;;  %v760_v54 = vadd.f32 %v757_v43, %v752_v38 }
  0x6e   : > { %v640_v56 = vmul.f32 %v639_v28, %v1748_v46  ;;  %v545_v35 = vmul.f32 %v544_v49, %v1748_v46  ;;  %v383_v57 = vmul.f32 %v382_v32, %v1745_v42  ;;  %v542_v58 = vmul.f32 0.0, %v539_v48 }
  0x6f   : > { %466 = vrot.lane.b32.xlu0 %v459_v30, %s1472_s30  ;;  %498 = vrot.lane.b32.xlu1 %v490_v61, %s1473_s3  ;;  %v547_v24 = vmul.f32 0.0, %v544_v49  ;;  %v388_v39 = vmul.f32 %v387_v37, %v1748_v46  ;;  %v780_v61 = vstv %s1242_s24  ;;  %v785_v62 = vstv %s1243_s27  ;;  %s1246_s24 = sld [smem:[#allocation6 + $0x17]] }
  0x70   : > { %v642_v59 = vadd.f32 %v640_v56, %v636_v50  ;;  %v548_v30 = vadd.f32 %v545_v35, %v540_v53  ;;  %v782_v52 = vmul.f32 %v780_v61, %v1730_v20  ;;  %v390_v1 = vmul.f32 0.0, %v387_v37  ;;  %s1247_s27 = sld [smem:[#allocation6 + $0x97]] }
  0x71   : > { %v391_v55 = vadd.f32 %v388_v39, %v383_v57  ;;  %v787_v3 = vmul.f32 %v785_v62, %v1734_v29  ;;  %v911_v6 = vstv %s1251_s16  ;;  %v541_v8 = vmul.f32 %v539_v48, %v1730_v20  ;;  %s1256_s16 = sld [smem:[#allocation6 + $0x18]] }
  0x72   : > { %v546_v44 = vmul.f32 %v544_v49, %v1734_v29  ;;  %v781_v13 = vmul.f32 %v780_v61, %v1745_v42  ;;  %v786_v4 = vmul.f32 %v785_v62, %v1748_v46  ;;  %v914_v16 = vmul.f32 %v911_v6, %v1734_v29 }
  0x73   : > { %339 = vrot.lane.b32.xlu0 %v331_v0, %s1473_s3  ;;  %622 = vrot.lane.b32.xlu1 %v615_v2, %s1472_s30  ;;  %v385_v0 = vmul.f32 0.0, %v382_v32  ;;  %v550_v2 = vadd.f32 %v547_v24, %v542_v58  ;;  %v790_v10 = vadd.f32 %v787_v3, %v782_v52  ;;  %v783_v21 = vmul.f32 0.0, %v780_v61 }
  0x74   : > { %v549_v12 = vadd.f32 %v546_v44, %v541_v8  ;;  %v917_v60 = vadd.f32 %v914_v16, %v909_v14  ;;  %v810_v27 = vstv %s1244_s5  ;;  %v815_v28 = vstv %s1245_s7  ;;  %s1218_s5 = sld [smem:[#allocation6 + $0x1]] }
  0x75   : > { %v393_v9 = vadd.f32 %v390_v1, %v385_v0  ;;  %v913_v33 = vmul.f32 %v911_v6, %v1748_v46  ;;  %v813_v40 = vmul.f32 0.0, %v810_v27  ;;  %v936_v43 = vstv %s1252_s8  ;;  %s1219_s7 = sld [smem:[#allocation6 + $0x81]]  ;;  %s1476_s8 = smov 34  }
  0x76   : > { %v938_v53 = vmul.f32 %v936_v43, %v1730_v20  ;;  %v688_v56 = vstv %s1236_s25  ;;  %v693_v35 = vstv %s1237_s28  ;;  %v812_v58 = vmul.f32 %v810_v27, %v1730_v20  ;;  %s1238_s25 = sld [smem:[#allocation6 + $0x3]] }
  0x77   : > { %496 = vrot.lane.b32.xlu0 %v489_v47, %s1473_s3  ;;  %366 = vrot.lane.b32.xlu1 %v360_v11, %s1474_s4  ;;  %v907_v47 = vmul.f32 0.0, %v906_v5  ;;  %v912_v11 = vmul.f32 0.0, %v911_v6  ;;  %v916_v38 = vadd.f32 %v913_v33, %v908_v22  ;;  %v817_v24 = vmul.f32 %v815_v28, %v1734_v29  ;;  %s1239_s28 = sld [smem:[#allocation6 + $0x83]] }
  0x78   : > { %v689_v39 = vmul.f32 %v688_v56, %v1745_v42  ;;  %v937_v61 = vmul.f32 %v936_v43, %v1745_v42  ;;  %v696_v1 = vmul.f32 0.0, %v693_v35  ;;  %v845_v3 = vstv %s1247_s27  ;;  %s1249_s27 = sld [smem:[#allocation6 + $0x84]] }
  0x79   : > { %v915_v7 = vadd.f32 %v912_v11, %v907_v47  ;;  %v820_v0 = vadd.f32 %v817_v24, %v812_v58  ;;  %v939_v6 = vmul.f32 0.0, %v936_v43  ;;  %v971_v11 = vstv %s1255_s29  ;;  %s1479_s29 = smov 31  }
  0x7a   : > { %v972_v16 = vmul.f32 %v971_v11, %v1748_v46 }
  0x7b   : > { %624 = vrot.lane.b32.xlu0 %v616_v17, %s1472_s30  ;;  %526 = vrot.lane.b32.xlu1 %v519_v18, %s1474_s4  ;;  %v658_v17 = vstv %s1234_s20  ;;  %v663_v18 = vstv %s1235_s26  ;;  %s1257_s20 = sld [smem:[#allocation6 + $0x98]] }
  0x7c   : > { %v660_v63 = vmul.f32 %v658_v17, %v1730_v20  ;;  %v665_v15 = vmul.f32 %v663_v18, %v1734_v29  ;;  %v659_v32 = vmul.f32 %v658_v17, %v1745_v42  ;;  %v664_v37 = vmul.f32 %v663_v18, %v1748_v46  ;;  %s1209_s26 = sld [smem:[#allocation6 + $0x80]] }
  0x7d   : > { %v661_v49 = vmul.f32 0.0, %v658_v17  ;;  %v666_v50 = vmul.f32 0.0, %v663_v18  ;;  %v846_v18 = vmul.f32 %v845_v3, %v1748_v46 }
  0x7e   : > { %v668_v34 = vadd.f32 %v665_v15, %v660_v63  ;;  %v667_v48 = vadd.f32 %v664_v37, %v659_v32  ;;  %v996_v63 = vstv %s1256_s16  ;;  %v973_v37 = vmul.f32 %v971_v11, %v1734_v29  ;;  %s1480_s16 = smov 30  }
  0x7f   : > { %368 = vrot.lane.b32.xlu0 %v361_v19, %s1474_s4  ;;  %765 = vrot.lane.b32.xlu1 %v759_v25, %s1472_s30  ;;  %v789_v19 = vadd.f32 %v786_v4, %v781_v13  ;;  %v788_v25 = vmul.f32 0.0, %v785_v62  ;;  %v669_v57 = vadd.f32 %v666_v50, %v661_v49  ;;  %v690_v13 = vmul.f32 %v688_v56, %v1730_v20 }
  0x80   : > { %v695_v4 = vmul.f32 %v693_v35, %v1734_v29  ;;  %v998_v33 = vmul.f32 %v996_v63, %v1730_v20  ;;  %v999_v49 = vmul.f32 0.0, %v996_v63 }
  0x81   : > { %v791_v31 = vadd.f32 %v788_v25, %v783_v21  ;;  %v1001_v15 = vstv %s1257_s20  ;;  %s1264_s20 = sshll.u32 %s1520_s13, 11  ;;  %s1100_s13 = scalar_lea.sflag [#allocation4], %s1611_s6 }
  0x82   : > { %v1002_v43 = vmul.f32 %v1001_v15, %v1748_v46  ;;  %v1004_v50 = vmul.f32 0.0, %v1001_v15 }
  0x83   : > { %524 = vrot.lane.b32.xlu0 %v518_v23, %s1474_s4  ;;  %769 = vrot.lane.b32.xlu1 %v761_v36, %s1472_s30  ;;  %v811_v23 = vmul.f32 %v810_v27, %v1745_v42  ;;  %v816_v36 = vmul.f32 %v815_v28, %v1748_v46 }
  0x85   : > { %v819_v26 = vadd.f32 %v816_v36, %v811_v23 }
  0x87   : > { %528 = vrot.lane.b32.xlu0 %v520_v41, %s1474_s4  ;;  %648 = vrot.lane.b32.xlu1 %v643_v45, %s1473_s3  ;;  %v818_v41 = vmul.f32 0.0, %v815_v28  ;;  %v941_v45 = vstv %s1253_s19  ;;  %s1477_s19 = smov 33  }
  0x88   : > { %v942_v62 = vmul.f32 %v941_v45, %v1748_v46  ;;  %v944_v8 = vmul.f32 0.0, %v941_v45 }
  0x8a   : > { %v945_v5 = vadd.f32 %v942_v62, %v937_v61  ;;  %v1921_v62 = vstv %s1218_s5 }
  0x8b   : > { %767 = vrot.lane.b32.xlu0 %v760_v54, %s1472_s30  ;;  %399 = vrot.lane.b32.xlu1 %v392_v51, %s1475_s23  ;;  %v821_v51 = vadd.f32 %v818_v41, %v813_v40  ;;  %v943_v54 = vmul.f32 %v941_v45, %v1734_v29  ;;  %v997_v41 = vmul.f32 %v996_v63, %v1745_v42 }
  0x8d   : > { %v1005_v45 = vadd.f32 %v1002_v43, %v997_v41 }
  0x8f   : > { %646 = vrot.lane.b32.xlu0 %v642_v59, %s1473_s3  ;;  %554 = vrot.lane.b32.xlu1 %v548_v30, %s1475_s23  ;;  %v946_v59 = vadd.f32 %v943_v54, %v938_v53  ;;  %v694_v30 = vmul.f32 %v693_v35, %v1748_v46  ;;  %v1007_v53 = vadd.f32 %v1004_v50, %v999_v49 }
  0x91   : > { %v697_v52 = vadd.f32 %v694_v30, %v689_v39 }
  0x93   : > { %397 = vrot.lane.b32.xlu0 %v391_v55, %s1475_s23  ;;  %558 = vrot.lane.b32.xlu1 %v550_v2, %s1475_s23  ;;  %v691_v55 = vmul.f32 0.0, %v688_v56  ;;  %v840_v2 = vstv %s1246_s24  ;;  %s1248_s24 = sld [smem:[#allocation6 + $0x4]] }
  0x94   : > { %v841_v17 = vmul.f32 %v840_v2, %v1745_v42  ;;  %v843_v28 = vmul.f32 0.0, %v840_v2 }
  0x95   : > { %v699_v44 = vadd.f32 %v696_v1, %v691_v55  ;;  %v435_v1 = vmul.f32 %v1921_v62, %v1745_v42 }
  0x96   : > { %v849_v27 = vadd.f32 %v846_v18, %v841_v17 }
  0x97   : > { %401 = vrot.lane.b32.xlu0 %v393_v9, %s1475_s23  ;;  %797 = vrot.lane.b32.xlu1 %v790_v10, %s1473_s3  ;;  %v842_v9 = vmul.f32 %v840_v2, %v1730_v20  ;;  %v847_v10 = vmul.f32 %v845_v3, %v1734_v29 }
  0x9b   : > { %556 = vrot.lane.b32.xlu0 %v549_v12, %s1475_s23  ;;  %921 = vrot.lane.b32.xlu1 %v915_v7, %s1472_s30  ;;  %v947_v12 = vadd.f32 %v944_v8, %v939_v6  ;;  %v850_v7 = vadd.f32 %v847_v10, %v842_v9 }
  0x9f   : > { %795 = vrot.lane.b32.xlu0 %v789_v19, %s1473_s3  ;;  %925 = vrot.lane.b32.xlu1 %v917_v60, %s1472_s30  ;;  %v698_v19 = vadd.f32 %v695_v4, %v690_v13  ;;  %v974_v60 = vmul.f32 0.0, %v971_v11  ;;  %v434_v11 = vmul.f32 0.0, %v1921_v62 }
  0xa3   : > { %799 = vrot.lane.b32.xlu0 %v791_v31, %s1473_s3  ;;  %675 = vrot.lane.b32.xlu1 %v668_v34, %s1474_s4  ;;  %v848_v31 = vmul.f32 0.0, %v845_v3  ;;  %v1003_v34 = vmul.f32 %v1001_v15, %v1734_v29 }
  0xa5   : > { %v851_v32 = vadd.f32 %v848_v31, %v843_v28 }
  0xa7   : > { %923 = vrot.lane.b32.xlu0 %v916_v38, %s1472_s30  ;;  %825 = vrot.lane.b32.xlu1 %v819_v26, %s1474_s4  ;;  %s1254_s30 = sld [smem:[#allocation6 + $0x13]]  ;;  %v1006_v38 = vadd.f32 %v1003_v34, %v998_v33 }
  0xab   : > { %673 = vrot.lane.b32.xlu0 %v667_v48, %s1474_s4  ;;  %829 = vrot.lane.b32.xlu1 %v821_v51, %s1474_s4 }
  0xad   : > { %v966_v47 = vstv %s1254_s30  ;;  %s1478_s30 = smov 32  }
  0xae   : > { %v967_v14 = vmul.f32 %v966_v47, %v1745_v42  ;;  %v969_v25 = vmul.f32 0.0, %v966_v47  ;;  %v968_v36 = vmul.f32 %v966_v47, %v1730_v20 }
  0xaf   : > { %677 = vrot.lane.b32.xlu0 %v669_v57, %s1474_s4  ;;  %953 = vrot.lane.b32.xlu1 %v946_v59, %s1473_s3  ;;  %v1911_v57 = vstv %s1209_s26 }
  0xb0   : > { %v975_v21 = vadd.f32 %v972_v16, %v967_v14  ;;  %v977_v22 = vadd.f32 %v974_v60, %v969_v25  ;;  %v976_v40 = vadd.f32 %v973_v37, %v968_v36  ;;  %v279_v24 = vmul.f32 0.0, %v1911_v57 }
  0xb1   : > { %v280_v39 = vmul.f32 %v1911_v57, %v1748_v46 }
  0xb3   : > { %827 = vrot.lane.b32.xlu0 %v820_v0, %s1474_s4  ;;  %703 = vrot.lane.b32.xlu1 %v697_v52, %s1475_s23  ;;  %v1923_v0 = vstv %s1219_s7  ;;  %s2174_s7 = scalar_lea.hbm %s2239_s2, %s1264_s20 }
  0xb4   : > { %v440_v2 = vmul.f32 %v1923_v0, %v1748_v46 }
  0xb6   : > { %v443_v47 = vadd.f32 %v440_v2, %v435_v1 }
  0xb7   : > { %951 = vrot.lane.b32.xlu0 %v945_v5, %s1473_s3  ;;  %707 = vrot.lane.b32.xlu1 %v699_v44, %s1475_s23 }
  0xbb   : > { %955 = vrot.lane.b32.xlu0 %v947_v12, %s1473_s3  ;;  %857 = vrot.lane.b32.xlu1 %v850_v7, %s1475_s23  ;;  %s272_s3 = sld [smem:[#allocation6]]  ;;  %v439_v12 = vmul.f32 0.0, %v1923_v0 }
  0xbe   : > { %v465_v23 = vpop.permute.xlu1 %464 }
  0xbf   : > { %705 = vrot.lane.b32.xlu0 %v698_v19, %s1475_s23  ;;  %981 = vrot.lane.b32.xlu1 %v975_v21, %s1474_s4  ;;  %v442_v21 = vadd.f32 %v439_v12, %v434_v11 }
  0xc0   : > { %v305_v48 = vpop.permute.xlu0 %304 }
  0xc1   : > { %v1909_v35 = vstv %s272_s3  ;;  %s2150_s3 = scalar_lea.vmem [#allocation7], %s1206_s14 }
  0xc2   : > { %v1896_v26 = vpop.permute.xlu1 %494  ;;  %v274_v58 = vmul.f32 0.0, %v1909_v35  ;;  %v275_v30 = vmul.f32 %v1909_v35, %v1745_v42  ;;  %v276_v1 = vmul.f32 %v1909_v35, %v1730_v20  ;;  %s1113_s26 = sshll.u32 %s2150_s3, 4  ;;  %s2178_s26 = int_to_ptr.vmem [resolvable:$true] %s1113_s26 }
  0xc3   : > { %855 = vrot.lane.b32.xlu0 %v849_v27, %s1475_s23  ;;  %985 = vrot.lane.b32.xlu1 %v977_v22, %s1474_s4 }
  0xc4   : > { %v336_v54 = vpop.permute.xlu0 %335  ;;  %v282_v52 = vadd.f32 %v279_v24, %v274_v58  ;;  %v283_v55 = vadd.f32 %v280_v39, %v275_v30 }
  0xc6   : > { %v1903_v51 = vpop.permute.xlu1 %370 }
  0xc7   : > { %859 = vrot.lane.b32.xlu0 %v851_v32, %s1475_s23  ;;  %1013 = vrot.lane.b32.xlu1 %v1006_v38, %s1475_s23 }
  0xc8   : > { %v621_v59 = vpop.permute.xlu0 %620 }
  0xcb   : > { %983 = vrot.lane.b32.xlu0 %v976_v40, %s1474_s4  ;;  %s1228_s4 = sld [smem:[#allocation6 + $0x2]] }
  0xcf   : > { %1011 = vrot.lane.b32.xlu0 %v1005_v45, %s1475_s23 }
  0xd1   : > { %v1940_v18 = vstv %s1228_s4  ;;  %s1398_s4 = scalar_lea.vmem %s2178_s26, 2048 }
  0xd2   : > { %v591_v28 = vmul.f32 %v1940_v18, %v1745_v42  ;;  %p1399_p1 = scmp.ne.s32.totalorder %s2178_s26, %s1398_s4 }
  0xd3   : > { %v1906_v56 = vpop.permute.xlu1 %308  ;;  %1015 = vrot.lane.b32.xlu0 %v1007_v53, %s1475_s23  ;;  %s1229_s23 = sld [smem:[#allocation6 + $0x82]] }
  0xd4   : > { %p1400_p6 = pnand %p1399_p1, %p2255_p7 }
  0xd6   : > { %p1401_p8 = pneg %p1400_p6 }
  0xd7   : > { %v1919_v61 = vpop.permute.xlu1 %468 }
  0xd9   : > { %v1942_v19 = vstv %s1229_s23 }
  0xda   : > { %v596_v31 = vmul.f32 %v1942_v19, %v1748_v46 }
  0xdc   : > { %v599_v40 = vadd.f32 %v596_v31, %v591_v28 }
  0xdd   : > { %v307_v3 = vpop.permute.xlu0 %306  ;;  %v338_v5 = vpop.permute.xlu1 %337 }
  0xde   : > { %v311_v6 = vsel %vm310_vm0, %v305_v48, %v307_v3  ;;  %v312_v8 = vsel %vm310_vm0, %v307_v3, %v1906_v56  ;;  %v342_v44 = vsel %vm341_vm1, %v336_v54, %v338_v5 }
  0xdf   : > { %v316_v9 = vadd.f32 %v311_v6, %v282_v52  ;;  %v317_v10 = vadd.f32 %v312_v8, %v283_v55  ;;  %v281_v55 = vmul.f32 %v1911_v57, %v1734_v29  ;;  %v436_v8 = vmul.f32 %v1921_v62, %v1730_v20 }
  0xe1   : > { %v467_v13 = vpop.permute.xlu0 %466  ;;  %v347_v4 = vadd.f32 %v342_v44, %v316_v9  ;;  %v1935_v7 = vpop.permute.xlu1 %498  ;;  %v284_v6 = vadd.f32 %v281_v55, %v276_v1  ;;  %v441_v44 = vmul.f32 %v1923_v0, %v1734_v29 }
  0xe2   : > { %v470_v14 = vsel %vm310_vm0, %v465_v23, %v467_v13  ;;  %v471_v16 = vsel %vm310_vm0, %v467_v13, %v1919_v61 }
  0xe3   : > { %v476_v17 = vadd.f32 %v471_v16, %v443_v47  ;;  %v475_v22 = vadd.f32 %v470_v14, %v442_v21  ;;  %v318_v47 = vadd.f32 %v1906_v56, %v284_v6  ;;  %v444_v11 = vadd.f32 %v441_v44, %v436_v8 }
  0xe5   : > { %v340_v25 = vpop.permute.xlu0 %339  ;;  %v623_v60 = vpop.permute.xlu1 %622 }
  0xe6   : > { %v343_v63 = vsel %vm341_vm1, %v338_v5, %v340_v25  ;;  %v1946_v15 = vsel %vm310_vm0, %v621_v59, %v623_v60  ;;  %v349_v0 = vadd.f32 %v340_v25, %v318_v47 }
  0xe7   : > { %v348_v27 = vadd.f32 %v343_v63, %v317_v10 }
  0xe9   : > { %v497_v33 = vpop.permute.xlu0 %496  ;;  %v367_v34 = vpop.permute.xlu1 %366 }
  0xea   : > { %v500_v23 = vsel %vm341_vm1, %v1896_v26, %v497_v33  ;;  %v501_v36 = vsel %vm341_vm1, %v497_v33, %v1935_v7  ;;  %v1956_v32 = vadd.f32 %v367_v34, %v347_v4  ;;  %v477_v4 = vadd.f32 %v1919_v61, %v444_v11 }
  0xeb   : > { %v505_v37 = vadd.f32 %v500_v23, %v475_v22  ;;  %v506_v38 = vadd.f32 %v501_v36, %v476_v17  ;;  %v590_v11 = vmul.f32 0.0, %v1940_v18 }
  0xed   : > { %v1958_v41 = vpop.permute.xlu0 %624  ;;  %v527_v43 = vpop.permute.xlu1 %526 }
  0xee   : > { %v627_v45 = vsel %vm310_vm0, %v623_v60, %v1958_v41  ;;  %v507_v60 = vadd.f32 %v1935_v7, %v477_v4  ;;  %v890_v4 = vstv %s1248_s24 }
  0xef   : > { %v632_v48 = vadd.f32 %v627_v45, %v599_v40  ;;  %v597_v45 = vmul.f32 %v1942_v19, %v1734_v29 }
  0xf1   : > { %v369_v49 = vpop.permute.xlu0 %368  ;;  %v766_v50 = vpop.permute.xlu1 %765 }
  0xf2   : > { %v373_v26 = vsel %vm372_vm2, %v367_v34, %v369_v49  ;;  %v374_v62 = vsel %vm372_vm2, %v369_v49, %v1903_v51 }
  0xf3   : > { %v1963_v53 = vadd.f32 %v373_v26, %v348_v27  ;;  %v380_v14 = vadd.f32 %v374_v62, %v349_v0 }
  0xf5   : > { %v525_v54 = vpop.permute.xlu0 %524  ;;  %v1965_v58 = vpop.permute.xlu1 %769 }
  0xf6   : > { %v530_v24 = vsel %vm372_vm2, %v525_v54, %v527_v43  ;;  %v1968_v59 = vadd.f32 %v525_v54, %v505_v37 }
  0xf7   : > { %v1970_v39 = vadd.f32 %v530_v24, %v506_v38  ;;  %v734_v24 = vstv %s1238_s25 }
  0xf8   : > { %v737_v1 = vmul.f32 %v734_v24, %v1730_v20 }
  0xf9   : > { %v529_v30 = vpop.permute.xlu0 %528  ;;  %v1972_v52 = vpop.permute.xlu1 %648 }
  0xfa   : > { %v531_v21 = vsel %vm372_vm2, %v527_v43, %v529_v30  ;;  %v592_v43 = vmul.f32 %v1940_v18, %v1730_v20  ;;  %v739_v30 = vstv %s1239_s28 }
  0xfb   : > { %v537_v27 = vadd.f32 %v531_v21, %v507_v60  ;;  %v742_v6 = vmul.f32 %v739_v30, %v1734_v29 }
  0xfd   : > { %v1978_v2 = vpop.permute.xlu0 %767  ;;  %v1980_v3 = vpop.permute.xlu1 %399  ;;  %v745_v62 = vadd.f32 %v742_v6, %v737_v1 }
  0xfe   : > { %v1984_v5 = vsel %vm310_vm0, %v766_v50, %v1978_v2  ;;  %v600_v50 = vadd.f32 %v597_v45, %v592_v43  ;;  %v893_v45 = vmul.f32 %v890_v4, %v1730_v20  ;;  %v772_v20 = vsel %vm310_vm0, %v1978_v2, %v1965_v58 }
 0x100   : > { %v633_v55 = vadd.f32 %v1958_v41, %v600_v50 }
 0x101   : > { %v1990_v9 = vpop.permute.xlu0 %646  ;;  %v1992_v57 = vpop.permute.xlu1 %554 }
 0x102   : > { %v650_v35 = vsel %vm341_vm1, %v1990_v9, %v1972_v52  ;;  %v656_v47 = vadd.f32 %v1972_v52, %v633_v55  ;;  %v741_v52 = vmul.f32 %v739_v30, %v1748_v46 }
 0x103   : > { %v1997_v10 = vadd.f32 %v650_v35, %v632_v48 }
 0x105   : > { %v2000_v12 = vpop.permute.xlu0 %397  ;;  %v559_v13 = vpop.permute.xlu1 %558 }
 0x106   : > { %v409_v43 = vadd.f32 %v2000_v12, %v1956_v32 }
 0x109   : > { %v402_v16 = vpop.permute.xlu0 %401  ;;  %v2005_v17 = vpop.permute.xlu1 %797 }
 0x10a   : > { %v405_v56 = vsel %vm403_vm3, %v1980_v3, %v402_v16 }
 0x10b   : > { %v411_v63 = vadd.f32 %v405_v56, %v380_v14  ;;  %v895_v14 = vstv %s1249_s27 }
 0x10c   : > { %v898_v50 = vmul.f32 %v895_v14, %v1734_v29  ;;  %v896_v55 = vmul.f32 0.0, %v895_v14 }
 0x10d   : > { %421 = vrot.lane.b32.xlu1 %v411_v63, %s1476_s8  ;;  %v2012_v51 = vpop.permute.xlu0 %556  ;;  %v2014_v61 = vpop.permute.xlu1 %921  ;;  %v736_v63 = vmul.f32 %v734_v24, %v1745_v42 }
 0x10e   : > { %v561_v25 = vsel %vm403_vm3, %v2012_v51, %v559_v13  ;;  %v595_v13 = vmul.f32 0.0, %v1942_v19  ;;  %v778_v19 = vadd.f32 %v1965_v58, %v745_v62 }
 0x10f   : > { %v567_v28 = vadd.f32 %v561_v25, %v537_v27  ;;  %v892_v27 = vmul.f32 %v890_v4, %v1745_v42  ;;  %v897_v25 = vmul.f32 %v895_v14, %v1748_v46  ;;  %v560_v42 = vsel %vm403_vm3, %v1992_v57, %v2012_v51 }
 0x110   : > { %v598_v60 = vadd.f32 %v595_v13, %v590_v11  ;;  %v891_v46 = vmul.f32 0.0, %v890_v4  ;;  %v744_v6 = vadd.f32 %v741_v52, %v736_v63  ;;  %v740_v11 = vmul.f32 0.0, %v739_v30 }
 0x111   : > { %577 = vrot.lane.b32.xlu0 %v567_v28, %s1477_s19  ;;  %v2019_v31 = vpop.permute.xlu0 %795  ;;  %v2021_v22 = vpop.permute.xlu1 %925  ;;  %v901_v13 = vadd.f32 %v898_v50, %v893_v45  ;;  %v404_v30 = vsel %vm403_vm3, %v2000_v12, %v1980_v3 }
 0x112   : > { %v631_v1 = vadd.f32 %v1946_v15, %v598_v60  ;;  %v801_v58 = vsel %vm341_vm1, %v2019_v31, %v2005_v17  ;;  %v899_v2 = vadd.f32 %v896_v55, %v891_v46  ;;  %v777_v4 = vadd.f32 %v772_v20, %v744_v6 }
 0x113   : > { %v934_v52 = vadd.f32 %v2021_v22, %v901_v13 }
 0x114   : > { %v654_v15 = vadd.f32 %v1990_v9, %v631_v1 }
 0x115   : > { %v800_v7 = vpop.permute.xlu0 %799  ;;  %v2023_v33 = vpop.permute.xlu1 %675 }
 0x116   : > { %v802_v18 = vsel %vm341_vm1, %v2005_v17, %v800_v7 }
 0x117   : > { %v808_v7 = vadd.f32 %v802_v18, %v778_v19 }
 0x119   : > { %v2025_v34 = vpop.permute.xlu0 %923  ;;  %v2027_v23 = vpop.permute.xlu1 %825 }
 0x11a   : > { %v928_v29 = vsel %vm310_vm0, %v2025_v34, %v2021_v22  ;;  %v927_v3 = vsel %vm310_vm0, %v2014_v61, %v2025_v34 }
 0x11d   : > { %v2029_v36 = vpop.permute.xlu0 %673  ;;  %v830_v37 = vpop.permute.xlu1 %829 }
 0x11e   : > { %v684_v9 = vadd.f32 %v2029_v36, %v654_v15  ;;  %v679_v22 = vsel %vm372_vm2, %v2029_v36, %v2023_v33 }
 0x121   : > { %v678_v38 = vpop.permute.xlu0 %677  ;;  %v2031_v40 = vpop.permute.xlu1 %953 }
 0x122   : > { %v680_v35 = vsel %vm372_vm2, %v2023_v33, %v678_v38 }
 0x123   : > { %v686_v0 = vadd.f32 %v680_v35, %v656_v47  ;;  %v900_v35 = vadd.f32 %v897_v25, %v892_v27 }
 0x125   : > { %v2037_v48 = vpop.permute.xlu0 %827  ;;  %v2039_v49 = vpop.permute.xlu1 %703  ;;  %v933_v14 = vadd.f32 %v928_v29, %v900_v35 }
 0x126   : > { %v832_v38 = vsel %vm372_vm2, %v2037_v48, %v830_v37  ;;  %v831_v12 = vsel %vm372_vm2, %v2027_v23, %v2037_v48  ;;  %v714_v63 = vadd.f32 %v2039_v49, %v684_v9  ;;  %v932_v48 = vadd.f32 %v927_v3, %v899_v2 }
 0x127   : > { %v838_v37 = vadd.f32 %v832_v38, %v808_v7  ;;  %v565_v38 = vadd.f32 %v1992_v57, %v1968_v59  ;;  %v685_v59 = vadd.f32 %v679_v22, %v1997_v10 }
 0x129   : > { %v2041_v26 = vpop.permute.xlu0 %951  ;;  %v708_v54 = vpop.permute.xlu1 %707 }
 0x12d   : > { %v2046_v8 = vpop.permute.xlu0 %955  ;;  %v2048_v44 = vpop.permute.xlu1 %857 }
 0x12e   : > { %v958_v61 = vsel %vm341_vm1, %v2031_v40, %v2046_v8 }
 0x131   : > { %v2055_v41 = vpop.permute.xlu0 %705  ;;  %v2059_v56 = vpop.permute.xlu1 %981 }
 0x132   : > { %v710_v16 = vsel %vm403_vm3, %v2055_v41, %v708_v54  ;;  %v735_v54 = vmul.f32 0.0, %v734_v24  ;;  %v566_v24 = vadd.f32 %v560_v42, %v1970_v39 }
 0x133   : > { %v716_v21 = vadd.f32 %v710_v16, %v686_v0  ;;  %v957_v0 = vsel %vm341_vm1, %v2041_v26, %v2031_v40  ;;  %v410_v16 = vadd.f32 %v404_v30, %v1963_v53 }
 0x134   : > { %v963_v60 = vadd.f32 %v957_v0, %v933_v14  ;;  %v743_v19 = vadd.f32 %v740_v11, %v735_v54  ;;  %v709_v54 = vsel %vm403_vm3, %v2039_v49, %v2055_v41 }
 0x135   : > { %724 = vrot.lane.b32.xlu1 %v716_v21, %s1478_s30  ;;  %v2069_v28 = vpop.permute.xlu0 %855  ;;  %v986_v47 = vpop.permute.xlu1 %985  ;;  %v807_v21 = vadd.f32 %v801_v58, %v777_v4  ;;  %v715_v46 = vadd.f32 %v709_v54, %v685_v59 }
 0x136   : > { %v861_v34 = vsel %vm403_vm3, %v2069_v28, %v2048_v44  ;;  %v776_v50 = vadd.f32 %v1984_v5, %v743_v19 }
 0x137   : > { %v837_v27 = vadd.f32 %v831_v12, %v807_v21 }
 0x138   : > { %v806_v42 = vadd.f32 %v2019_v31, %v776_v50 }
 0x139   : > { %417 = vrot.lane.b32.xlu1 %v409_v43, %s1476_s8  ;;  %v860_v32 = vpop.permute.xlu0 %859  ;;  %v1014_v18 = vpop.permute.xlu1 %1013  ;;  %v964_v43 = vadd.f32 %v958_v61, %v934_v52  ;;  %v867_v7 = vadd.f32 %v861_v34, %v837_v27 }
 0x13a   : > { %v862_v51 = vsel %vm403_vm3, %v2048_v44, %v860_v32  ;;  %v962_v44 = vadd.f32 %v2041_v26, %v932_v48  ;;  %v836_v1 = vadd.f32 %v2027_v23, %v806_v42 }
 0x13b   : > { %v868_v62 = vadd.f32 %v862_v51, %v838_v37 }
 0x13c   : > { %v992_v57 = vadd.f32 %v2059_v56, %v962_v44  ;;  %v866_v10 = vadd.f32 %v2069_v28, %v836_v1  ;;  %v1343_v1 = vld [vmem:[%s1617_s17] sm:$0xff] }
 0x13d   : > { %575 = vrot.lane.b32.xlu1 %v566_v24, %s1477_s19  ;;  %878 = vrot.lane.b32.xlu0 %v868_v62, %s1479_s29  ;;  %v984_v39 = vpop.permute.xlu0 %983 }
 0x13e   : > { %v987_v17 = vsel %vm372_vm2, %v2059_v56, %v984_v39  ;;  %v988_v40 = vsel %vm372_vm2, %v984_v39, %v986_v47  ;;  %v245_v56 = vlaneseq }
 0x13f   : > { %v993_v25 = vadd.f32 %v987_v17, %v963_v60  ;;  %v994_v33 = vadd.f32 %v988_v40, %v964_v43 }
 0x140   : > { %v246_v35 = vand.u32 127, %v245_v56 }
 0x141   : > { %720 = vrot.lane.b32.xlu1 %v714_v63, %s1478_s30  ;;  %v1012_v53 = vpop.permute.xlu0 %1011  ;;  %419 = vrot.lane.b32.xlu0 %v410_v16, %s1476_s8 }
 0x142   : > { %v1017_v8 = vsel %vm403_vm3, %v1012_v53, %v1014_v18  ;;  %v1022_v5 = vadd.f32 %v1012_v53, %v992_v57  ;;  %v247_v23 = vadd.s32 128, %v246_v35  ;;  %v252_v29 = vand.u32 15, %v246_v35 }
 0x143   : > { %v1023_v45 = vadd.f32 %v1017_v8, %v993_v25 }
 0x144   : > { %v259_v20 = vand.u32 15, %v247_v23  ;;  %vm568_vm7 = vcmp.ge.s32.totalorder %v252_v29, 1  ;;  %vm412_vm9 = vcmp.ge.s32.totalorder %v252_v29, 2  ;;  %vm869_vm12 = vcmp.lt.s32.totalorder %v252_v29, 15  ;;  %v1348_v23 = vld [vmem:[%s1617_s17 + $0x18] sm:$0xff] }
 0x145   : > { %876 = vrot.lane.b32.xlu1 %v867_v7, %s1479_s29  ;;  %v1016_v36 = vpop.permute.xlu0 %1015  ;;  %573 = vrot.lane.b32.xlu0 %v565_v38, %s1477_s19  ;;  %vm1025_vm15 = vcmp.lt.s32.totalorder %v252_v29, 14  ;;  %v1350_v29 = vld [vmem:[%s1617_s17 + $0x38] sm:$0xff] }
 0x146   : > { %v1018_v26 = vsel %vm403_vm3, %v1014_v18, %v1016_v36  ;;  %vm413_vm6 = vcmp.ge.s32.totalorder %v259_v20, 2  ;;  %vm569_vm8 = vcmp.ge.s32.totalorder %v259_v20, 1  ;;  %vm870_vm13 = vcmp.lt.s32.totalorder %v259_v20, 15 }
 0x147   : > { %v1024_v55 = vadd.f32 %v1018_v26, %v994_v33  ;;  %vm1026_vm0 = vcmp.lt.s32.totalorder %v259_v20, 14  ;;  %v1060_v36 = vshrl.u32 %v245_v56, 7  ;;  %v1345_v56 = vld [vmem:[%s1617_s17 + $0x20] sm:$0xff] }
 0x149   : > { %1030 = vrot.lane.b32.xlu1 %v1022_v5, %s1480_s16  ;;  %722 = vrot.lane.b32.xlu0 %v715_v46, %s1478_s30  ;;  %v1061_v26 = vsub.s32 0, %v1060_v36 }
 0x14d   : > { %1034 = vrot.lane.b32.xlu1 %v1024_v55, %s1480_s16  ;;  %874 = vrot.lane.b32.xlu0 %v866_v10, %s1479_s29 }
 0x151   : > { %1032 = vrot.lane.b32.xlu0 %v1023_v45, %s1480_s16 }
 0x17f   : > { %v422_v49 = vpop.permute.xlu1 %421 }
 0x183   : > { %v578_v6 = vpop.permute.xlu0 %577 }
 0x1a7   : > { %v725_v41 = vpop.permute.xlu1 %724 }
 0x1ab   : > { %v418_v31 = vpop.permute.xlu1 %417 }
 0x1af   : > { %v576_v37 = vpop.permute.xlu1 %575  ;;  %v879_v32 = vpop.permute.xlu0 %878 }
 0x1b0   : > { %v581_v13 = vsel %vm579_vm5, %v576_v37, %v578_v6 }
 0x1b1   : > { %v585_v0 = vsel %vm569_vm8, %v581_v13, 0.0 }
 0x1b3   : > { %v721_v47 = vpop.permute.xlu1 %720  ;;  %v420_v11 = vpop.permute.xlu0 %419 }
 0x1b4   : > { %v425_v15 = vsel %vm423_vm4, %v420_v11, %v422_v49  ;;  %v424_v62 = vsel %vm423_vm4, %v418_v31, %v420_v11  ;;  %v1344_v49 = vld [vmem:[%s1617_s17 + $0x10] sm:$0xff]  ;;  %v1349_v11 = vld [vmem:[%s1617_s17 + $0x28] sm:$0xff] }
 0x1b5   : > { %v429_v30 = vsel %vm413_vm6, %v425_v15, 0.0  ;;  %v428_v4 = vsel %vm412_vm9, %v424_v62, 0.0  ;;  %v1346_v31 = vld [vmem:[%s1617_s17 + $0x30] sm:$0xff] }
 0x1b6   : > { %v587_v39 = vadd.f32 %v585_v0, %v429_v30  ;;  %v1353_v62 = vld [vmem:[%s1617_s17 + $0x50] sm:$0xff]  ;;  %v1355_v0 = vld [vmem:[%s1617_s17 + $0x60] sm:$0xff] }
 0x1b7   : > { %v877_v28 = vpop.permute.xlu1 %876  ;;  %v574_v51 = vpop.permute.xlu0 %573 }
 0x1b8   : > { %v580_v24 = vsel %vm579_vm5, %v574_v51, %v576_v37  ;;  %v882_v16 = vsel %vm880_vm11, %v877_v28, %v879_v32  ;;  %v1347_v37 = vld [vmem:[%s1617_s17 + $0x8] sm:$0xff]  ;;  %v1351_v51 = vld [vmem:[%s1617_s17 + $0x40] sm:$0xff] }
 0x1b9   : > { %v584_v58 = vsel %vm568_vm7, %v580_v24, 0.0  ;;  %v886_v19 = vsel %vm870_vm13, %v882_v16, 0.0  ;;  %v1352_v24 = vld [vmem:[%s1617_s17 + $0x48] sm:$0xff] }
 0x1ba   : > { %v586_v3 = vadd.f32 %v584_v58, %v428_v4  ;;  %v1354_v58 = vld [vmem:[%s1617_s17 + $0x58] sm:$0xff] }
 0x1bb   : > { %v723_v2 = vpop.permute.xlu0 %722  ;;  %v1031_v14 = vpop.permute.xlu1 %1030 }
 0x1bc   : > { %v728_v9 = vsel %vm726_vm10, %v723_v2, %v725_v41  ;;  %v727_v12 = vsel %vm726_vm10, %v721_v47, %v723_v2 }
 0x1bd   : > { %v732_v21 = vadd.f32 %v728_v9, %v587_v39  ;;  %v731_v18 = vadd.f32 %v727_v12, %v586_v3  ;;  %v1357_v39 = vld [vmem:[%s1617_s17 + $0x70] sm:$0xff]  ;;  %v1358_v12 = vld [vmem:[%s1617_s17 + $0x78] sm:$0xff] }
 0x1bf   : > { %v875_v17 = vpop.permute.xlu0 %874  ;;  %v1035_v52 = vpop.permute.xlu1 %1034  ;;  %v888_v34 = vadd.f32 %v886_v19, %v732_v21 }
 0x1c0   : > { %v881_v60 = vsel %vm880_vm11, %v875_v17, %v877_v28 }
 0x1c1   : > { %v885_v63 = vsel %vm869_vm12, %v881_v60, 0.0 }
 0x1c2   : > { %v887_v48 = vadd.f32 %v885_v63, %v731_v18 }
 0x1c3   : > { %v1033_v61 = vpop.permute.xlu0 %1032 }
 0x1c4   : > { %v1037_v27 = vsel %vm1036_vm14, %v1031_v14, %v1033_v61  ;;  %v1038_v25 = vsel %vm1036_vm14, %v1033_v61, %v1035_v52  ;;  %v1356_v14 = vld [vmem:[%s1617_s17 + $0x68] sm:$0xff]  ;;  %s1481_s17 = smov [#allocation7]  }
 0x1c5   : > { %v1041_v53 = vsel %vm1025_vm15, %v1037_v27, 0.0  ;;  %v1042_v38 = vsel %vm1026_vm0, %v1038_v25, 0.0  ;;  %s1402_s23 = sshll.u32 %s1481_s17, 4  ;;  %s1403_s23 = int_to_ptr.vmem [resolvable:$false] %s1402_s23 }
 0x1c6   : > { %v1043_v22 = vadd.f32 %v1041_v53, %v887_v48  ;;  %v1044_v40 = vadd.f32 %v1042_v38, %v888_v34  ;;  %s1404_s8 = scalar_lea.vmem %s1403_s23, 4096  ;;  %p1405_p9 = scmp.lt.s32.totalorder %s2178_s26, %s1403_s23 }
 0x1c7   : > { %p1406_p10 = scmp.lt.s32.totalorder %s1404_s8, %s1398_s4 }
 0x1c8   : > { %v1045_v8 = vmax.f32 %v1043_v22, 0.0  ;;  %v1046_v44 = vmax.f32 %v1044_v40, 0.0 }
 0x1c9   : > { %p1407_p2 = por %p1406_p10, %p1405_p9 }
 0x1ca   : > { %v1047_v43 = vsub.f32 0.0, %v1045_v8  ;;  %v1048_v7 = vsub.f32 0.0, %v1046_v44 }
 0x1cb   : > { %p1408_p0 = pnand %p1407_p2, %p1401_p8 }
 0x1cc   : > { %v1049_v45 = vmul.f32 1.442695, %v1047_v43  ;;  %v1051_v50 = vmul.f32 1.442695, %v1048_v7 }
 0x1ce   : > { %1335 = vpow2.f32 %v1049_v45 }
 0x1cf   : > { %1337 = vpow2.f32 %v1051_v50 }
 0x1db   : > { %v1336_v54 = vpop.eup %1335 }
 0x1dc   : > { %v1338_v59 = vpop.eup %1337  ;;  %v1053_v57 = vadd.f32 1.0, %v1336_v54 }
 0x1dd   : > { %v1054_v33 = vadd.f32 1.0, %v1338_v59 }
 0x1de   : > { %1339 = vrcp.f32 %v1053_v57 }
 0x1df   : > { %1341 = vrcp.f32 %v1054_v33 }
 0x1eb   : > { %v1340_v42 = vpop.eup %1339 }
 0x1ec   : > { %v1342_v46 = vpop.eup %1341  ;;  %v1062_v5 = vrot.slane %v1340_v42, %v1061_v26 }
 0x1ed   : > { %v1066_v55 = vrot.slane %v1342_v46, %v1061_v26 }
 0x1ee   : > { %v1067_v10 = vmul.f32 %v1343_v1, %v1062_v5  ;;  %v1069_v41 = vmul.f32 %v1344_v49, %v1062_v5  ;;  %v1071_v6 = vmul.f32 %v1345_v56, %v1062_v5  ;;  %v1073_v35 = vmul.f32 %v1346_v31, %v1062_v5 }
 0x1ef   : > { %v1068_v32 = vmul.f32 %v1347_v37, %v1066_v55  ;;  %v1070_v47 = vmul.f32 %v1348_v23, %v1066_v55  ;;  %v1072_v20 = vmul.f32 %v1349_v11, %v1066_v55  ;;  %v1074_v28 = vmul.f32 %v1350_v29, %v1066_v55 }
 0x1f0   : > { %v1075_v15 = vmul.f32 %v1351_v51, %v1062_v5  ;;  %v1076_v13 = vmul.f32 %v1352_v24, %v1066_v55  ;;  %v1077_v30 = vmul.f32 %v1353_v62, %v1062_v5  ;;  %v1078_v2 = vmul.f32 %v1354_v58, %v1066_v55  ;;  %1083 = vst [vmem:[%s2150_s3] sm:$0xff] %v1067_v10 }
 0x1f1   : > { %1085 = vst [vmem:[%s2150_s3 + $0x10] sm:$0xff] %v1069_v41  ;;  %1087 = vst [vmem:[%s2150_s3 + $0x20] sm:$0xff] %v1071_v6  ;;  %v1079_v4 = vmul.f32 %v1355_v0, %v1062_v5  ;;  %v1080_v9 = vmul.f32 %v1356_v14, %v1066_v55  ;;  %v1081_v3 = vmul.f32 %v1357_v39, %v1062_v5 }
 0x1f2   : > { %1089 = vst [vmem:[%s2150_s3 + $0x30] sm:$0xff] %v1073_v35  ;;  %v1082_v17 = vmul.f32 %v1358_v12, %v1066_v55  ;;  %1084 = vst [vmem:[%s2150_s3 + $0x8] sm:$0xff] %v1068_v32 }
 0x1f3   : > { %1086 = vst [vmem:[%s2150_s3 + $0x18] sm:$0xff] %v1070_v47  ;;  %1088 = vst [vmem:[%s2150_s3 + $0x28] sm:$0xff] %v1072_v20 }
 0x1f4   : > { %1090 = vst [vmem:[%s2150_s3 + $0x38] sm:$0xff] %v1074_v28  ;;  %1091 = vst [vmem:[%s2150_s3 + $0x40] sm:$0xff] %v1075_v15 }
 0x1f5   : > { %1092 = vst [vmem:[%s2150_s3 + $0x48] sm:$0xff] %v1076_v13  ;;  %1093 = vst [vmem:[%s2150_s3 + $0x50] sm:$0xff] %v1077_v30 }
 0x1f6   : > { %1094 = vst [vmem:[%s2150_s3 + $0x58] sm:$0xff] %v1078_v2  ;;  %1095 = vst [vmem:[%s2150_s3 + $0x60] sm:$0xff] %v1079_v4 }
 0x1f7   : > { %1096 = vst [vmem:[%s2150_s3 + $0x68] sm:$0xff] %v1080_v9  ;;  %1097 = vst [vmem:[%s2150_s3 + $0x70] sm:$0xff] %v1081_v3 }
 0x1f8   : > { %1098 = vst [vmem:[%s2150_s3 + $0x78] sm:$0xff] %v1082_v17 }
 0x1f9   : > { %1411 = shalt.err (!%p1408_p0)
}
 0x1fa   : > { %s1412_s19 = scalar_lea.hbm %s2174_s7, 2048  ;;  %s1416_s24 = scalar_lea.hbm %s2239_s2, 4096 }
 0x1fb   : > { %p1413_p3 = scmp.ne.s32.totalorder %s2174_s7, %s1412_s19  ;;  %p1417_p11 = scmp.lt.s32.totalorder %s2174_s7, %s2239_s2 }
 0x1fc   : > { %p1418_p12 = scmp.lt.s32.totalorder %s1416_s24, %s1412_s19 }
 0x1fd   : > { %p1414_p5 = pnand %p1413_p3, %p2255_p7 }
 0x1fe   : > { %p1419_p13 = por %p1418_p12, %p1417_p11 }
 0x1ff   : > { %p1415_p4 = pneg %p1414_p5 }
 0x201   : > { %p1420_p1 = pnand %p1419_p13, %p1415_p4 }
 0x203   : > { %1423 = shalt.err (!%p1420_p1)
}
 0x204   : > { %s1482_s29 = smov 256   ;;  %s1483_s16 = smov 16  }
 0x205   : > { %1271 = dma.vmem_to_hbm [thread:$0]  (%p2255_p7), %s2178_s26, 2048, %s2174_s7, %s1100_s13, %s1482_s29, %s1482_s29, %s1483_s16  }
 0x206 PF: > { %s1128_s20 = sand.u32 1, %s1454_s9   ;;  %p2256_p6 = scmp.ne.s32.totalorder %s2247_s22, 0 }
 0x207   : > { %p2257_p8 = scmp.ge.s32.totalorder %s1466_s12, 2  ;;  %s1129_s3 = scalar_lea.sflag [#allocation4], %s1128_s20 }
 0x209   : > { %p1282_p9 = pnand %p2257_p8, %p2256_p6 }
 0x20b   : > { %p1283_p10 = pneg %p1282_p9 }
 0x20d   : > { %1449 = dma.done.wait (%p1283_p10), %s1129_s3, 2048  }
 0x20e   : > { %1451 = vsyncadd (%p1283_p10), %s1129_s3, 4294965248  ;;  %p16_p2 = scmp.ge.s32.totalorder %s1524_s15, 4   ;;  %s2258_s9 = smov %s1458_s10 }
 0x20f   : > { %s2259_s10 = smov %s1462_s11  ;;  %s2260_s11 = smov %s1536_s18 }
 0x210   : > { %s2261_s12 = smov %s1524_s15  ;;  %18 = sbr.rel (!%p16_p2) target bundleno = 6 (0x6), region = 78 }
 0x215   :  { %1134 = vsyncpa [#allocation3], 1 }
 0x216   :  { %1136 = vsyncpa [#allocation3 + $0x1], 1 }
 0x217   :  { %1137 = vsyncpa [#allocation4], 1 }
 0x218   :  { %1139 = vsyncpa [#allocation4 + $0x1], 1 }
 0x219   :  { %1140 = vsyncpa [#allocation5], 1 }
 0x21a   :  { %1142 = vsyncpa [#allocation5 + $0x1], 1 }

</bundles_post_ra>
